<compile_context>
chip_gen: v5e
topology: v5e:2x2
jax: 0.10.0
libtpu: 0.0.40
codegen_flags: <defaults>
</compile_context>

<pallas_src>
import functools

import jax
import jax.numpy as jnp
from jax import lax
from jax.experimental import pallas as pl
from jax.experimental.pallas import tpu as pltpu

_BN_EPS = 1e-5   # torch.nn.BatchNorm2d default
_IN_EPS = 1e-5   # torch.nn.InstanceNorm2d default


def _dot(w, h):
    # (Co, Ci) @ (Ci, N) -> (Co, N); bf16 operands, f32 accumulation on the MXU.
    return lax.dot_general(w, h, (((1,), (0,)), ((), ())),
                           preferred_element_type=jnp.float32)


# --------------------------------------------------------------------------
# Fused Pallas kernel (memoized per shape / pre flag)
# --------------------------------------------------------------------------

@functools.lru_cache(maxsize=None)
def _resnet_block_call(B, Cin, Cout, n_true, n_pad, bt, pre):
    inv_n = 1.0 / float(n_true)
    masked = (n_pad != n_true)
    n_vec = 5 if pre else 4          # packed per-channel columns

    def kernel(*refs):
        if pre:
            x_ref, wr_ref, w1_ref, w2_ref, vec_ref, o_ref = refs
        else:
            x_ref, w1_ref, w2_ref, vec_ref, o_ref = refs

        vec = vec_ref[...]                               # (Cout, n_vec) f32
        if pre:
            br = vec[:, 0:1]
            s1, t1, s2, t2 = vec[:, 1:2], vec[:, 2:3], vec[:, 3:4], vec[:, 4:5]
            wr = wr_ref[...]                             # (Cout, Cin) bf16
        else:
            s1, t1, s2, t2 = vec[:, 0:1], vec[:, 1:2], vec[:, 2:3], vec[:, 3:4]
        w1 = w1_ref[...]                                 # bf16
        w2 = w2_ref[...]                                 # bf16

        if masked:
            lane = lax.broadcasted_iota(jnp.int32, (1, n_pad), 1)
            mask = lane < n_true

        def inst_bn(h, s, t):
            """Fused InstanceNorm + folded eval-mode BatchNorm: one FMA pass."""
            hm = jnp.where(mask, h, 0.0) if masked else h
            mu = jnp.sum(hm, axis=-1, keepdims=True) * inv_n
            msq = jnp.sum(hm * hm, axis=-1, keepdims=True) * inv_n
            var = jnp.maximum(msq - mu * mu, 0.0)
            a = s * lax.rsqrt(var + _IN_EPS)
            c = t - mu * a
            return h * a + c

        for b in range(bt):          # Bt samples per grid step (static unroll)
            if pre:
                xb = x_ref[b]                            # (Cin, N) bf16
                x1 = _dot(wr, xb) + br                   # residual conv (f32)
            else:
                xf = x_ref[b]                            # (Cout, N) f32
                xb = xf.astype(jnp.bfloat16)
                x1 = xf                                  # identity residual

            # conv1x1 -> IN -> BN -> ReLU  (conv bias dropped: IN cancels it)
            h = jnp.maximum(inst_bn(_dot(w1, xb), s1, t1), 0.0)
            # conv1x1 -> IN -> BN
            h = inst_bn(_dot(w2, h.astype(jnp.bfloat16)), s2, t2)
            # residual add + final ReLU
            o_ref[b] = jnp.maximum(h + x1, 0.0)

    in_specs = [pl.BlockSpec((bt, Cin, n_pad), lambda i: (i, 0, 0))]
    if pre:
        in_specs.append(pl.BlockSpec((Cout, Cin), lambda i: (0, 0)))
    in_specs += [pl.BlockSpec((Cout, Cin), lambda i: (0, 0)),
                 pl.BlockSpec((Cout, Cout), lambda i: (0, 0)),
                 pl.BlockSpec((Cout, n_vec), lambda i: (0, 0))]

    f = pl.pallas_call(
        kernel,
        out_shape=jax.ShapeDtypeStruct((B, Cout, n_pad), jnp.float32),
        grid=(B // bt,),
        in_specs=in_specs,
        out_specs=pl.BlockSpec((bt, Cout, n_pad), lambda i: (i, 0, 0)),
        compiler_params=pltpu.CompilerParams(
            dimension_semantics=("parallel",),
            vmem_limit_bytes=32 * 1024 * 1024),
    )
    return jax.jit(f)


# --------------------------------------------------------------------------
# Wrapper + parameter folding
# --------------------------------------------------------------------------

def _bn_fold(bn):
    """Eval-mode BatchNorm2d -> per-channel (scale, shift)."""
    s = bn["gamma"] * lax.rsqrt(bn["running_var"] + _BN_EPS)
    t = bn["beta"] - bn["running_mean"] * s
    return s, t


def _pick_bt(B, Cin, Cout, n_pad, x_bytes):
    """Samples per grid step: big enough to amortize grid overhead / DMA,
    small enough to keep double-buffered tiles well inside v7x's 64 MiB VMEM."""
    per_sample = n_pad * (Cin * x_bytes + 6 * Cout * 4)   # x tile + out + temps
    cap = max(1, (4 << 20) // max(per_sample, 1))
    best = 1
    for bt in range(1, B + 1):
        # keep grid >= 2 so both v7x TensorCores get work
        if B % bt == 0 and bt <= cap and (B // bt >= 2 or B == 1):
            best = bt
    return best


def resnet_block_forward(params, x, pre=False):
    """x: (B, Cin, N, 1) float32 (PyTorch NCHW with W=1) -> (B, Cout, N, 1)."""
    B, Cin, n_true, W = x.shape
    assert W == 1
    Cout = params["conv1"]["W"].shape[0]
    if not pre:
        assert Cin == Cout, "pre=False requires inchannel == outchannel"

    x2 = x[..., 0].astype(jnp.float32)                    # (B, Cin, N)
    n_pad = ((n_true + 127) // 128) * 128                 # lane-dense loads/stores
    if n_pad != n_true:
        x2 = jnp.pad(x2, ((0, 0), (0, 0), (0, n_pad - n_true)))
    if pre:
        x2 = x2.astype(jnp.bfloat16)                      # x only feeds the MXU

    s1, t1 = _bn_fold(params["bn1"])
    s2, t2 = _bn_fold(params["bn2"])
    cols = [s1, t1, s2, t2]
    if pre:
        cols = [params["right"]["b"]] + cols
    vec = jnp.stack([c.astype(jnp.float32) for c in cols], axis=1)  # (Cout, 4|5)

    mat = lambda w: w.reshape(w.shape[0], -1).astype(jnp.bfloat16)  # pre-cast bf16
    args = [x2]
    if pre:
        args.append(mat(params["right"]["W"]))
    args += [mat(params["conv1"]["W"]), mat(params["conv2"]["W"]), vec]
    # NOTE: conv1/conv2 biases intentionally dropped — InstanceNorm's per-channel
    # mean subtraction cancels a per-channel bias exactly.

    bt = _pick_bt(B, Cin, Cout, n_pad, 2 if pre else 4)
    out = _resnet_block_call(B, Cin, Cout, n_true, n_pad, bt, bool(pre))(*args)
    if n_pad != n_true:
        out = out[:, :, :n_true]
    return out[..., None]                                  # (B, Cout, N, 1)


# --------------------------------------------------------------------------
# Pure-JAX reference (mirrors PyTorch, incl. conv biases, bf16 MXU casts)
# --------------------------------------------------------------------------

def resnet_block_reference(params, x, pre=False):
    xb = x[..., 0].astype(jnp.float32)

    def conv(p, h):
        w = p["W"].reshape(p["W"].shape[0], -1)
        y = jnp.einsum("oc,bcn->bon",
                       w.astype(jnp.bfloat16), h.astype(jnp.bfloat16),
                       preferred_element_type=jnp.float32)
        return y + p["b"].reshape(1, -1, 1)

    def inorm(h):
        mu = jnp.mean(h, axis=-1, keepdims=True)
        var = jnp.mean((h - mu) ** 2, axis=-1, keepdims=True)
        return (h - mu) * lax.rsqrt(var + _IN_EPS)

    def bn(pbn, h):
        s, t = _bn_fold(pbn)
        return h * s.reshape(1, -1, 1) + t.reshape(1, -1, 1)

    x1 = conv(params["right"], xb) if pre else xb
    h = bn(params["bn1"], inorm(conv(params["conv1"], xb)))
    h = jnp.maximum(h, 0.0)
    h = bn(params["bn2"], inorm(conv(params["conv2"], h)))
    return jnp.maximum(h + x1, 0.0)[..., None]


# --------------------------------------------------------------------------

if __name__ == "__main__":
    key = jax.random.PRNGKey(0)
    keys = iter(jax.random.split(key, 64))

    def conv_p(ci, co):
        return {"W": 0.1 * jax.random.normal(next(keys), (co, ci, 1, 1), jnp.float32),
                "b": 0.05 * jax.random.normal(next(keys), (co,), jnp.float32)}

    def bn_p(c):
        return {"gamma": 1.0 + 0.1 * jax.random.normal(next(keys), (c,), jnp.float32),
                "beta": 0.05 * jax.random.normal(next(keys), (c,), jnp.float32),
                "running_mean": 0.1 * jax.random.normal(next(keys), (c,), jnp.float32),
                "running_var": 1.0 + 0.1 * jax.random.uniform(next(keys), (c,), jnp.float32)}

    # --- Test 1: chained blocks, lane-aligned N, Bt>1 per grid step ---------
    B, Cin, Cout, N = 4, 16, 32, 256
    params_pre = {"right": conv_p(Cin, Cout),
                  "conv1": conv_p(Cin, Cout), "bn1": bn_p(Cout),
                  "conv2": conv_p(Cout, Cout), "bn2": bn_p(Cout)}
    params_id = {"conv1": conv_p(Cout, Cout), "bn1": bn_p(Cout),
                 "conv2": conv_p(Cout, Cout), "bn2": bn_p(Cout)}
    x = jax.random.normal(next(keys), (B, Cin, N, 1), jnp.float32)

    y1 = resnet_block_forward(params_pre, x, pre=True)
    y2 = resnet_block_forward(params_id, y1, pre=False)
    jax.block_until_ready((y1, y2))

    r1 = resnet_block_reference(params_pre, x, pre=True)
    r2 = resnet_block_reference(params_id, r1, pre=False)

    assert y1.shape == (B, Cout, N, 1) and y2.shape == (B, Cout, N, 1)
    assert bool(jnp.all(jnp.isfinite(y2)))
    assert bool(jnp.allclose(y1, r1, atol=2e-2, rtol=2e-2))
    assert bool(jnp.allclose(y2, r2, atol=2e-2, rtol=2e-2))

    # --- Test 2: non-128-multiple N (padded + masked InstanceNorm stats) ----
    B3, C3, N3 = 2, 32, 100
    params_u = {"conv1": conv_p(C3, C3), "bn1": bn_p(C3),
                "conv2": conv_p(C3, C3), "bn2": bn_p(C3)}
    xu = jax.random.normal(next(keys), (B3, C3, N3, 1), jnp.float32)
    yu = resnet_block_forward(params_u, xu, pre=False)
    jax.block_until_ready(yu)
    ru = resnet_block_reference(params_u, xu, pre=False)
    assert yu.shape == (B3, C3, N3, 1)
    assert bool(jnp.allclose(yu, ru, atol=2e-2, rtol=2e-2))

    print("KERNEL_OK")
</pallas_src>

<mosaic_0001>
module attributes {stable_mosaic.version = 11 : i64} {
  func.func @kernel(%arg0: i32, %arg1: memref<2x16x256xbf16, #tpu.memory_space<vmem>>, %arg2: memref<32x16xbf16, #tpu.memory_space<vmem>>, %arg3: memref<32x16xbf16, #tpu.memory_space<vmem>>, %arg4: memref<32x32xbf16, #tpu.memory_space<vmem>>, %arg5: memref<32x5xf32, #tpu.memory_space<vmem>>, %arg6: memref<2x32x256xf32, #tpu.memory_space<vmem>>) attributes {dimension_semantics = [#tpu.dimension_semantics<parallel>], iteration_bounds = array<i64: 2>, scalar_prefetch = 0 : i64, scratch_operands = 0 : i64, tpu.core_type = #tpu.core_type<tc>, window_params = [{transform_indices = @transform_0, window_bounds = array<i64: 2, 16, 256>}, {pipeline_mode = #tpu.pipeline_mode<synchronous>, transform_indices = @transform_1, window_bounds = array<i64: 32, 16>}, {pipeline_mode = #tpu.pipeline_mode<synchronous>, transform_indices = @transform_2, window_bounds = array<i64: 32, 16>}, {pipeline_mode = #tpu.pipeline_mode<synchronous>, transform_indices = @transform_3, window_bounds = array<i64: 32, 32>}, {pipeline_mode = #tpu.pipeline_mode<synchronous>, transform_indices = @transform_4, window_bounds = array<i64: 32, 5>}, {transform_indices = @transform_5, window_bounds = array<i64: 2, 32, 256>}]} {
    %c0 = arith.constant 0 : index
    %c0_0 = arith.constant 0 : index
    %0 = vector.load %arg5[%c0, %c0_0] : memref<32x5xf32, #tpu.memory_space<vmem>>, vector<32x5xf32>
    %1 = vector.extract_strided_slice %0 {offsets = [0, 0], sizes = [32, 1], strides = [1, 1]} : vector<32x5xf32> to vector<32x1xf32>
    %2 = vector.extract_strided_slice %0 {offsets = [0, 1], sizes = [32, 1], strides = [1, 1]} : vector<32x5xf32> to vector<32x1xf32>
    %3 = vector.extract_strided_slice %0 {offsets = [0, 2], sizes = [32, 1], strides = [1, 1]} : vector<32x5xf32> to vector<32x1xf32>
    %4 = vector.extract_strided_slice %0 {offsets = [0, 3], sizes = [32, 1], strides = [1, 1]} : vector<32x5xf32> to vector<32x1xf32>
    %5 = vector.extract_strided_slice %0 {offsets = [0, 4], sizes = [32, 1], strides = [1, 1]} : vector<32x5xf32> to vector<32x1xf32>
    %c0_1 = arith.constant 0 : index
    %c0_2 = arith.constant 0 : index
    %6 = vector.load %arg2[%c0_1, %c0_2] : memref<32x16xbf16, #tpu.memory_space<vmem>>, vector<32x16xbf16>
    %c0_3 = arith.constant 0 : index
    %c0_4 = arith.constant 0 : index
    %7 = vector.load %arg3[%c0_3, %c0_4] : memref<32x16xbf16, #tpu.memory_space<vmem>>, vector<32x16xbf16>
    %c0_5 = arith.constant 0 : index
    %c0_6 = arith.constant 0 : index
    %8 = vector.load %arg4[%c0_5, %c0_6] : memref<32x32xbf16, #tpu.memory_space<vmem>>, vector<32x32xbf16>
    %c0_7 = arith.constant 0 : index
    %c0_8 = arith.constant 0 : index
    %c0_9 = arith.constant 0 : index
    %9 = vector.load %arg1[%c0_7, %c0_8, %c0_9] : memref<2x16x256xbf16, #tpu.memory_space<vmem>>, vector<1x16x256xbf16>
    %10 = vector.shape_cast %9 : vector<1x16x256xbf16> to vector<16x256xbf16>
    %cst = arith.constant dense<0.000000e+00> : vector<32x256xf32>
    %11 = tpu.matmul %6, %10, %cst {dimension_numbers = #tpu.dot_dimension_numbers<[1], [0], [0], [1], [0, 0, 1, 1], [], []>} : vector<32x16xbf16>, vector<16x256xbf16>, vector<32x256xf32> -> vector<32x256xf32>
    %12 = vector.broadcast %1 : vector<32x1xf32> to vector<32x256xf32>
    %13 = arith.addf %11, %12 : vector<32x256xf32>
    %cst_10 = arith.constant dense<0.000000e+00> : vector<32x256xf32>
    %14 = tpu.matmul %7, %10, %cst_10 {dimension_numbers = #tpu.dot_dimension_numbers<[1], [0], [0], [1], [0, 0, 1, 1], [], []>} : vector<32x16xbf16>, vector<16x256xbf16>, vector<32x256xf32> -> vector<32x256xf32>
    %cst_11 = arith.constant dense<0.000000e+00> : vector<32xf32>
    %15 = vector.multi_reduction <add>, %14, %cst_11 [1] : vector<32x256xf32> to vector<32xf32>
    %16 = vector.shape_cast %15 : vector<32xf32> to vector<32x1xf32>
    %cst_12 = arith.constant 3.906250e-03 : f32
    %17 = vector.broadcast %cst_12 : f32 to vector<32x1xf32>
    %18 = arith.mulf %16, %17 : vector<32x1xf32>
    %19 = arith.mulf %14, %14 : vector<32x256xf32>
    %cst_13 = arith.constant dense<0.000000e+00> : vector<32xf32>
    %20 = vector.multi_reduction <add>, %19, %cst_13 [1] : vector<32x256xf32> to vector<32xf32>
    %21 = vector.shape_cast %20 : vector<32xf32> to vector<32x1xf32>
    %cst_14 = arith.constant 3.906250e-03 : f32
    %22 = vector.broadcast %cst_14 : f32 to vector<32x1xf32>
    %23 = arith.mulf %21, %22 : vector<32x1xf32>
    %24 = arith.mulf %18, %18 : vector<32x1xf32>
    %25 = arith.subf %23, %24 : vector<32x1xf32>
    %cst_15 = arith.constant 0.000000e+00 : f32
    %26 = vector.broadcast %cst_15 : f32 to vector<32x1xf32>
    %27 = arith.maximumf %25, %26 : vector<32x1xf32>
    %cst_16 = arith.constant 9.99999974E-6 : f32
    %28 = vector.broadcast %cst_16 : f32 to vector<32x1xf32>
    %29 = arith.addf %27, %28 : vector<32x1xf32>
    %30 = math.rsqrt %29 : vector<32x1xf32>
    %31 = arith.mulf %2, %30 : vector<32x1xf32>
    %32 = arith.mulf %18, %31 : vector<32x1xf32>
    %33 = arith.subf %3, %32 : vector<32x1xf32>
    %34 = vector.broadcast %31 : vector<32x1xf32> to vector<32x256xf32>
    %35 = arith.mulf %14, %34 : vector<32x256xf32>
    %36 = vector.broadcast %33 : vector<32x1xf32> to vector<32x256xf32>
    %37 = arith.addf %35, %36 : vector<32x256xf32>
    %cst_17 = arith.constant 0.000000e+00 : f32
    %38 = vector.broadcast %cst_17 : f32 to vector<32x256xf32>
    %39 = arith.maximumf %37, %38 : vector<32x256xf32>
    %40 = arith.truncf %39 : vector<32x256xf32> to vector<32x256xbf16>
    %cst_18 = arith.constant dense<0.000000e+00> : vector<32x256xf32>
    %41 = tpu.matmul %8, %40, %cst_18 {dimension_numbers = #tpu.dot_dimension_numbers<[1], [0], [0], [1], [0, 0, 1, 1], [], []>} : vector<32x32xbf16>, vector<32x256xbf16>, vector<32x256xf32> -> vector<32x256xf32>
    %cst_19 = arith.constant dense<0.000000e+00> : vector<32xf32>
    %42 = vector.multi_reduction <add>, %41, %cst_19 [1] : vector<32x256xf32> to vector<32xf32>
    %43 = vector.shape_cast %42 : vector<32xf32> to vector<32x1xf32>
    %cst_20 = arith.constant 3.906250e-03 : f32
    %44 = vector.broadcast %cst_20 : f32 to vector<32x1xf32>
    %45 = arith.mulf %43, %44 : vector<32x1xf32>
    %46 = arith.mulf %41, %41 : vector<32x256xf32>
    %cst_21 = arith.constant dense<0.000000e+00> : vector<32xf32>
    %47 = vector.multi_reduction <add>, %46, %cst_21 [1] : vector<32x256xf32> to vector<32xf32>
    %48 = vector.shape_cast %47 : vector<32xf32> to vector<32x1xf32>
    %cst_22 = arith.constant 3.906250e-03 : f32
    %49 = vector.broadcast %cst_22 : f32 to vector<32x1xf32>
    %50 = arith.mulf %48, %49 : vector<32x1xf32>
    %51 = arith.mulf %45, %45 : vector<32x1xf32>
    %52 = arith.subf %50, %51 : vector<32x1xf32>
    %cst_23 = arith.constant 0.000000e+00 : f32
    %53 = vector.broadcast %cst_23 : f32 to vector<32x1xf32>
    %54 = arith.maximumf %52, %53 : vector<32x1xf32>
    %cst_24 = arith.constant 9.99999974E-6 : f32
    %55 = vector.broadcast %cst_24 : f32 to vector<32x1xf32>
    %56 = arith.addf %54, %55 : vector<32x1xf32>
    %57 = math.rsqrt %56 : vector<32x1xf32>
    %58 = arith.mulf %4, %57 : vector<32x1xf32>
    %59 = arith.mulf %45, %58 : vector<32x1xf32>
    %60 = arith.subf %5, %59 : vector<32x1xf32>
    %61 = vector.broadcast %58 : vector<32x1xf32> to vector<32x256xf32>
    %62 = arith.mulf %41, %61 : vector<32x256xf32>
    %63 = vector.broadcast %60 : vector<32x1xf32> to vector<32x256xf32>
    %64 = arith.addf %62, %63 : vector<32x256xf32>
    %65 = arith.addf %64, %13 : vector<32x256xf32>
    %cst_25 = arith.constant 0.000000e+00 : f32
    %66 = vector.broadcast %cst_25 : f32 to vector<32x256xf32>
    %67 = arith.maximumf %65, %66 : vector<32x256xf32>
    %c0_26 = arith.constant 0 : index
    %c0_27 = arith.constant 0 : index
    %c0_28 = arith.constant 0 : index
    %68 = vector.load %arg6[%c0_26, %c0_27, %c0_28] : memref<2x32x256xf32, #tpu.memory_space<vmem>>, vector<1x32x256xf32>
    %69 = vector.shape_cast %68 : vector<1x32x256xf32> to vector<32x256xf32>
    %70 = vector.shape_cast %67 : vector<32x256xf32> to vector<1x32x256xf32>
    tpu.vector_store %arg6[%c0_26, %c0_27, %c0_28], %70 {strides = array<i32>} : memref<2x32x256xf32, #tpu.memory_space<vmem>>, vector<1x32x256xf32>,
    %c1 = arith.constant 1 : index
    %c0_29 = arith.constant 0 : index
    %c0_30 = arith.constant 0 : index
    %71 = vector.load %arg1[%c1, %c0_29, %c0_30] : memref<2x16x256xbf16, #tpu.memory_space<vmem>>, vector<1x16x256xbf16>
    %72 = vector.shape_cast %71 : vector<1x16x256xbf16> to vector<16x256xbf16>
    %cst_31 = arith.constant dense<0.000000e+00> : vector<32x256xf32>
    %73 = tpu.matmul %6, %72, %cst_31 {dimension_numbers = #tpu.dot_dimension_numbers<[1], [0], [0], [1], [0, 0, 1, 1], [], []>} : vector<32x16xbf16>, vector<16x256xbf16>, vector<32x256xf32> -> vector<32x256xf32>
    %74 = vector.broadcast %1 : vector<32x1xf32> to vector<32x256xf32>
    %75 = arith.addf %73, %74 : vector<32x256xf32>
    %cst_32 = arith.constant dense<0.000000e+00> : vector<32x256xf32>
    %76 = tpu.matmul %7, %72, %cst_32 {dimension_numbers = #tpu.dot_dimension_numbers<[1], [0], [0], [1], [0, 0, 1, 1], [], []>} : vector<32x16xbf16>, vector<16x256xbf16>, vector<32x256xf32> -> vector<32x256xf32>
    %cst_33 = arith.constant dense<0.000000e+00> : vector<32xf32>
    %77 = vector.multi_reduction <add>, %76, %cst_33 [1] : vector<32x256xf32> to vector<32xf32>
    %78 = vector.shape_cast %77 : vector<32xf32> to vector<32x1xf32>
    %cst_34 = arith.constant 3.906250e-03 : f32
    %79 = vector.broadcast %cst_34 : f32 to vector<32x1xf32>
    %80 = arith.mulf %78, %79 : vector<32x1xf32>
    %81 = arith.mulf %76, %76 : vector<32x256xf32>
    %cst_35 = arith.constant dense<0.000000e+00> : vector<32xf32>
    %82 = vector.multi_reduction <add>, %81, %cst_35 [1] : vector<32x256xf32> to vector<32xf32>
    %83 = vector.shape_cast %82 : vector<32xf32> to vector<32x1xf32>
    %cst_36 = arith.constant 3.906250e-03 : f32
    %84 = vector.broadcast %cst_36 : f32 to vector<32x1xf32>
    %85 = arith.mulf %83, %84 : vector<32x1xf32>
    %86 = arith.mulf %80, %80 : vector<32x1xf32>
    %87 = arith.subf %85, %86 : vector<32x1xf32>
    %cst_37 = arith.constant 0.000000e+00 : f32
    %88 = vector.broadcast %cst_37 : f32 to vector<32x1xf32>
    %89 = arith.maximumf %87, %88 : vector<32x1xf32>
    %cst_38 = arith.constant 9.99999974E-6 : f32
    %90 = vector.broadcast %cst_38 : f32 to vector<32x1xf32>
    %91 = arith.addf %89, %90 : vector<32x1xf32>
    %92 = math.rsqrt %91 : vector<32x1xf32>
    %93 = arith.mulf %2, %92 : vector<32x1xf32>
    %94 = arith.mulf %80, %93 : vector<32x1xf32>
    %95 = arith.subf %3, %94 : vector<32x1xf32>
    %96 = vector.broadcast %93 : vector<32x1xf32> to vector<32x256xf32>
    %97 = arith.mulf %76, %96 : vector<32x256xf32>
    %98 = vector.broadcast %95 : vector<32x1xf32> to vector<32x256xf32>
    %99 = arith.addf %97, %98 : vector<32x256xf32>
    %cst_39 = arith.constant 0.000000e+00 : f32
    %100 = vector.broadcast %cst_39 : f32 to vector<32x256xf32>
    %101 = arith.maximumf %99, %100 : vector<32x256xf32>
    %102 = arith.truncf %101 : vector<32x256xf32> to vector<32x256xbf16>
    %cst_40 = arith.constant dense<0.000000e+00> : vector<32x256xf32>
    %103 = tpu.matmul %8, %102, %cst_40 {dimension_numbers = #tpu.dot_dimension_numbers<[1], [0], [0], [1], [0, 0, 1, 1], [], []>} : vector<32x32xbf16>, vector<32x256xbf16>, vector<32x256xf32> -> vector<32x256xf32>
    %cst_41 = arith.constant dense<0.000000e+00> : vector<32xf32>
    %104 = vector.multi_reduction <add>, %103, %cst_41 [1] : vector<32x256xf32> to vector<32xf32>
    %105 = vector.shape_cast %104 : vector<32xf32> to vector<32x1xf32>
    %cst_42 = arith.constant 3.906250e-03 : f32
    %106 = vector.broadcast %cst_42 : f32 to vector<32x1xf32>
    %107 = arith.mulf %105, %106 : vector<32x1xf32>
    %108 = arith.mulf %103, %103 : vector<32x256xf32>
    %cst_43 = arith.constant dense<0.000000e+00> : vector<32xf32>
    %109 = vector.multi_reduction <add>, %108, %cst_43 [1] : vector<32x256xf32> to vector<32xf32>
    %110 = vector.shape_cast %109 : vector<32xf32> to vector<32x1xf32>
    %cst_44 = arith.constant 3.906250e-03 : f32
    %111 = vector.broadcast %cst_44 : f32 to vector<32x1xf32>
    %112 = arith.mulf %110, %111 : vector<32x1xf32>
    %113 = arith.mulf %107, %107 : vector<32x1xf32>
    %114 = arith.subf %112, %113 : vector<32x1xf32>
    %cst_45 = arith.constant 0.000000e+00 : f32
    %115 = vector.broadcast %cst_45 : f32 to vector<32x1xf32>
    %116 = arith.maximumf %114, %115 : vector<32x1xf32>
    %cst_46 = arith.constant 9.99999974E-6 : f32
    %117 = vector.broadcast %cst_46 : f32 to vector<32x1xf32>
    %118 = arith.addf %116, %117 : vector<32x1xf32>
    %119 = math.rsqrt %118 : vector<32x1xf32>
    %120 = arith.mulf %4, %119 : vector<32x1xf32>
    %121 = arith.mulf %107, %120 : vector<32x1xf32>
    %122 = arith.subf %5, %121 : vector<32x1xf32>
    %123 = vector.broadcast %120 : vector<32x1xf32> to vector<32x256xf32>
    %124 = arith.mulf %103, %123 : vector<32x256xf32>
    %125 = vector.broadcast %122 : vector<32x1xf32> to vector<32x256xf32>
    %126 = arith.addf %124, %125 : vector<32x256xf32>
    %127 = arith.addf %126, %75 : vector<32x256xf32>
    %cst_47 = arith.constant 0.000000e+00 : f32
    %128 = vector.broadcast %cst_47 : f32 to vector<32x256xf32>
    %129 = arith.maximumf %127, %128 : vector<32x256xf32>
    %c1_48 = arith.constant 1 : index
    %c0_49 = arith.constant 0 : index
    %c0_50 = arith.constant 0 : index
    %130 = vector.load %arg6[%c1_48, %c0_49, %c0_50] : memref<2x32x256xf32, #tpu.memory_space<vmem>>, vector<1x32x256xf32>
    %131 = vector.shape_cast %130 : vector<1x32x256xf32> to vector<32x256xf32>
    %132 = vector.shape_cast %129 : vector<32x256xf32> to vector<1x32x256xf32>
    tpu.vector_store %arg6[%c1_48, %c0_49, %c0_50], %132 {strides = array<i32>} : memref<2x32x256xf32, #tpu.memory_space<vmem>>, vector<1x32x256xf32>,
    return
  }
  func.func @transform_0(%arg0: i32) -> (i32, i32, i32) {
    %c0_i32 = arith.constant 0 : i32
    %c0_i32_0 = arith.constant 0 : i32
    %c0_i32_1 = arith.constant 0 : i32
    return %arg0, %c0_i32, %c0_i32_0 : i32, i32, i32
  }
  func.func @transform_1(%arg0: i32) -> (i32, i32) {
    %c0_i32 = arith.constant 0 : i32
    %c0_i32_0 = arith.constant 0 : i32
    %c0_i32_1 = arith.constant 0 : i32
    return %c0_i32, %c0_i32_0 : i32, i32
  }
  func.func @transform_2(%arg0: i32) -> (i32, i32) {
    %c0_i32 = arith.constant 0 : i32
    %c0_i32_0 = arith.constant 0 : i32
    %c0_i32_1 = arith.constant 0 : i32
    return %c0_i32, %c0_i32_0 : i32, i32
  }
  func.func @transform_3(%arg0: i32) -> (i32, i32) {
    %c0_i32 = arith.constant 0 : i32
    %c0_i32_0 = arith.constant 0 : i32
    %c0_i32_1 = arith.constant 0 : i32
    return %c0_i32, %c0_i32_0 : i32, i32
  }
  func.func @transform_4(%arg0: i32) -> (i32, i32) {
    %c0_i32 = arith.constant 0 : i32
    %c0_i32_0 = arith.constant 0 : i32
    %c0_i32_1 = arith.constant 0 : i32
    return %c0_i32, %c0_i32_0 : i32, i32
  }
  func.func @transform_5(%arg0: i32) -> (i32, i32, i32) {
    %c0_i32 = arith.constant 0 : i32
    %c0_i32_0 = arith.constant 0 : i32
    %c0_i32_1 = arith.constant 0 : i32
    return %arg0, %c0_i32, %c0_i32_0 : i32, i32, i32
  }
}

</mosaic_0001>

<bundles_post_ra>
// kernel: tpu_custom_call.1
= control target key start
LH: loop header
LB: loop body
LE: loop exit
PB: predicated region body
PF: predicated region fallthrough
CT: control target
= control target key end

     0   :  { %10 = vsyncpa [#allocation3], 0  ;;  %s2479_s0 = inlined_call_operand.hbm [shape: bf16[4,16,256], index: 0, kind: input, shape index: {}]   ;;  %s2480_s1 = inlined_call_operand.vmem [shape: bf16[32,16], index: 1, kind: input, shape index: {}]   ;;  %s2481_s2 = inlined_call_operand.vmem [shape: bf16[32,16], index: 2, kind: input, shape index: {}]   ;;  %s2482_s3 = inlined_call_operand.vmem [shape: bf16[32,32], index: 3, kind: input, shape index: {}]   ;;  %s2483_s4 = inlined_call_operand.vmem [shape: f32[32,5], index: 4, kind: input, shape index: {}]   ;;  %s2484_s5 = inlined_call_operand.hbm [shape: f32[4,32,256], index: 5, kind: output, shape index: {}]  }
   0x1   :  { %12 = vsyncpa [#allocation3 + $0x1], 0 }
   0x2   :  { %13 = vsyncpa [#allocation4], 0 }
   0x3   :  { %15 = vsyncpa [#allocation4 + $0x1], 0  ;;  %s1829_s18 = smov 0   ;;  %s1831_s19 = smov 0  }
   0x4   :  { %s1833_s20 = smov 0   ;;  %s1835_s21 = smov 0  }
   0x5 LB: > { %s1850_s22 = sadd.s32 4294967295, %s1787_s21   ;;  %s1471_s23 = sadd.s32 4294967294, %s1787_s21   ;;  %s1787_s21 = sphi %s1835_s21, %s2497_s21   ;;  %s1783_s20 = sphi %s1833_s20, %s2496_s20   ;;  %s1779_s19 = sphi %s1831_s19, %s2495_s19   ;;  %s1775_s18 = sphi %s1829_s18, %s2494_s18  }
   0x6   : > { %s1854_s24 = sadd.s32 1, %s1787_s21   ;;  %s28_s25 = sadd.s32 1, %s1783_s20 }
   0x7   : > { %s25_s26 = ssub.s32 %s1787_s21, %s1854_s24  ;;  %p35_p0 = scmp.ne.s32.totalorder %s1783_s20, %s1779_s19 }
   0x8   : > { %p26_p1 = scmp.eq.s32.totalorder %s25_s26, 0  ;;  %p36_p2 = scmp.eq.s32.totalorder %s1787_s21, 0 }
   0x9   : > { %p41_p3 = scmp.ne.s32.totalorder %s1779_s19, %s1775_s18  ;;  %p42_p4 = scmp.eq.s32.totalorder %s1850_s22, 0 }
   0xa   : > { %s1866_s27 = scalar_select %p26_p1, %s1783_s20, %s28_s25  }
   0xb   : > { %p1868_p5 = por %p36_p2, %p35_p0  ;;  %p1872_p6 = por %p42_p4, %p41_p3 }
   0xc   : > { %p149_p7 = scmp.eq.s32.totalorder %s1850_s22, 1  ;;  %p155_p8 = scmp.eq.s32.totalorder %s1471_s23, 1 }
   0xd   : > { %p1587_p10 = scmp.lt.s32.totalorder %s1787_s21, 2  ;;  %s187_s7 = sand.u32 1, %s1783_s20  }
   0xe   : > { %p1879_p11 = por %p149_p7, %p35_p0  ;;  %p1883_p12 = por %p155_p8, %p41_p3 }
   0xf   : > { %s1562_s8 = sshll.u32 %s1787_s21, 5  ;;  %s1474_s9 = sshll.u32 %s187_s7, 5 }
  0x10   : > { %s197_s12 = scalar_lea.hbm %s2479_s0, %s1562_s8  ;;  %s191_s14 = scalar_lea.vmem [#allocation2], %s1474_s9 }
  0x11   : > { %s198_s13 = sshll.u32 %s197_s12, 4  ;;  %s200_s15 = sshll.u32 %s191_s14, 4  ;;  %s199_s13 = int_to_ptr.hbm [resolvable:$true] %s198_s13  ;;  %s201_s15 = int_to_ptr.vmem [resolvable:$true] %s200_s15 }
  0x12   : > { %p1894_p13 = pnand %p1587_p10, %p1868_p5  ;;  %p1478_p0 = scmp.ge.s32.totalorder %s1787_s21, 1 }
  0x13   : > { %p208_p1 = scmp.lt.s32.totalorder %s1787_s21, 3  ;;  %s188_s17 = scalar_lea.sflag [#allocation3], %s187_s7 }
  0x14   : > { %s1691_s23 = sshra.s32 %s199_s13, 4  ;;  %p1695_p3 = pneg %p1894_p13  ;;  %s1692_s23 = int_to_ptr.hbm [resolvable:$true] %s1691_s23 }
  0x15   : > { %s1693_s25 = scalar_lea.hbm %s1692_s23, 32  ;;  %s1698_s28 = scalar_lea.hbm %s2479_s0, 64 }
  0x16   : > { %p1694_p2 = scmp.ne.s32.totalorder %s1692_s23, %s1693_s25  ;;  %p1699_p5 = scmp.lt.s32.totalorder %s1692_s23, %s2479_s0 }
  0x17   : > { %p1700_p8 = scmp.lt.s32.totalorder %s1698_s28, %s1693_s25 }
  0x18   : > { %p1696_p4 = pnand %p1695_p3, %p1694_p2 }
  0x19   : > { %p1701_p10 = por %p1700_p8, %p1699_p5 }
  0x1a   : > { %p1697_p7 = pneg %p1696_p4 }
  0x1c   : > { %p1702_p9 = pnand %p1701_p10, %p1697_p7 }
  0x1e   : > { %1705 = shalt.err (!%p1702_p9)
}
  0x1f   : > { %s1789_s7 = smov 128   ;;  %s1790_s11 = smov 8  }
  0x20   : > { %1582 = dma.hbm_to_vmem [thread:$0]  (!%p1894_p13), %s199_s13, 512, %s201_s15, %s188_s17, %s1789_s7, %s1789_s7, %s1790_s11  }
  0x21   : > { %p209_p2 = pnand %p1478_p0, %p208_p1 }
  0x22   : > { %s1915_s12 = sand.u32 (!%p209_p2), 1, %s1779_s19  }
  0x23   : > { %212 = sbr.rel (%p209_p2) target bundleno = 1710 (0x6ae), region = 40  ;;  %s1479_s14 = sshll.u32 (!%p209_p2), %s1915_s12, 5 }
  0x24   : > { %s215_s23 = scalar_lea.sflag (!%p209_p2), [#allocation3], %s1915_s12  ;;  %s1919_s25 = scalar_lea.vmem (!%p209_p2), [#allocation2], %s1479_s14 }
  0x28   : > { %1766 = dma.done.wait (%p1872_p6), %s215_s23, 512  }
  0x29   : > { %1768 = vsyncadd (%p1872_p6), %s215_s23, 4294966784  ;;  %v1491_v0 = vld [vmem:[%s1919_s25] sm:$0xf]  ;;  %v1570_v1 = vld [vmem:[%s1919_s25 + $0x4] sm:$0xf0]  ;;  %vm307_vm0 = vcmask 130048  }
  0x2a   : > { %v1569_v2 = vld [vmem:[%s1919_s25 + $0x4] sm:$0xf]  ;;  %v1492_v3 = vor.u32 %v1570_v1, %v1491_v0  ;;  %v1493_v4 = vld [vmem:[%s1919_s25 + $0x8] sm:$0xf0]  ;;  %v1791_v52 = vmov 1   ;;  %s1792_s8 = smov 1  }
  0x2b   : > { %v1496_v5 = vor.u32 %v1569_v2, %v1493_v4  ;;  %v1932_v6 = vld [vmem:[%s2481_s2] sm:$0xff]  ;;  %v1941_v7 = vld [vmem:[%s2481_s2 + $0x8] sm:$0xff]  ;;  %1631 = vset.pattern.permute.xlu0 %v1791_v52  ;;  %1633 = vset.pattern.permute.xlu1 %v1791_v52  ;;  %vm608_vm13 = vcmask 261120   ;;  %s1480_s15 = sshll.u32 %s1915_s12, 7  ;;  %s1574_s29 = sshll.u32 %s1850_s22, 7 }
  0x2c   : > { %375 = vmatpush.bf16.msra.mxu2 %v1492_v3  ;;  %321 = vmatpush.bf16.msra.mxu0 %v1492_v3  ;;  %s1394_s17 = scalar_lea.hbm %s2484_s5, %s1574_s29  ;;  %s1382_s28 = scalar_lea.sflag [#allocation4], %s1915_s12 }
  0x2d   : > { %394 = vmatpush.bf16.msra.mxu3 %v1496_v5  ;;  %340 = vmatpush.bf16.msra.mxu1 %v1496_v5  ;;  %s1397_s26 = sshll.u32 %s1394_s17, 4  ;;  %s1741_s14 = scalar_lea.hbm %s2484_s5, 256  ;;  %s1398_s26 = int_to_ptr.hbm [resolvable:$true] %s1397_s26 }
  0x2e   : > { %1632 = vset.pattern.permute.xlu2 %v1791_v52  ;;  %s1735_s9 = sshra.s32 %s1398_s26, 4  ;;  %s1736_s9 = int_to_ptr.hbm [resolvable:$true] %s1735_s9 }
  0x2f   : > { %1509 = vmatmul.msk.bf16.vlgmr.msra.gmra.mxu2 %vm307_vm0, %v1932_v6  ;;  %s1737_s10 = scalar_lea.hbm %s1736_s9, 128  ;;  %p1742_p0 = scmp.lt.s32.totalorder %s1736_s9, %s2484_s5 }
  0x30   : > { %1511 = vmatmul.msk.bf16.vlgmr.msra.gmra.mxu3 %vm307_vm0, %v1932_v6  ;;  %p1738_p6 = scmp.ne.s32.totalorder %s1736_s9, %s1737_s10  ;;  %p1743_p1 = scmp.lt.s32.totalorder %s1741_s14, %s1737_s10 }
  0x32   : > { %p1739_p9 = pnand %p1738_p6, %p1879_p11  ;;  %p1744_p3 = por %p1743_p1, %p1742_p0 }
  0x34   : > { %p1740_p13 = pneg %p1739_p9 }
  0x36   : > { %p1745_p4 = pnand %p1744_p3, %p1740_p13 }
  0x3f   : > { %1510 = vmatmul.msk.bf16.gmra.mxu2 %vm307_vm0, %v1941_v7 }
  0x40   : > { %1512 = vmatmul.msk.bf16.gmra.mxu3 %vm307_vm0, %v1941_v7 }
  0xb2   : > { %v1947_v8 = vpop.f32.mrf.mxu2 }
  0xb3   : > { %v1949_v9 = vpop.f32.mrf.mxu3  ;;  %v422_v26 = vmul.f32 %v1947_v8, %v1947_v8 }
  0xb4   : > { %v406_v10 = vadd.f32 %v1949_v9, %v1947_v8  ;;  %v423_v27 = vmul.f32 %v1949_v9, %v1949_v9 }
  0xb6   : > { %407 = vadd.xlane.f32.xlu2 %v406_v10  ;;  %v430_v30 = vadd.f32 %v423_v27, %v422_v26 }
  0xba   : > { %v1953_v11 = vpop.f32.mrf.mxu2 }
  0xbb   : > { %v1955_v12 = vpop.f32.mrf.mxu3  ;;  %v424_v28 = vmul.f32 %v1953_v11, %v1953_v11 }
  0xbc   : > { %v409_v13 = vadd.f32 %v1955_v12, %v1953_v11  ;;  %v425_v29 = vmul.f32 %v1955_v12, %v1955_v12 }
  0xbe   : > { %410 = vadd.xlane.f32.xlu2 %v409_v13  ;;  %v433_v31 = vadd.f32 %v425_v29, %v424_v28 }
  0xc2   : > { %v1959_v14 = vpop.f32.mrf.mxu2 }
  0xc3   : > { %v1961_v15 = vpop.f32.mrf.mxu3  ;;  %v426_v16 = vmul.f32 %v1959_v14, %v1959_v14 }
  0xc4   : > { %v412_v17 = vadd.f32 %v1961_v15, %v1959_v14  ;;  %v427_v18 = vmul.f32 %v1961_v15, %v1961_v15 }
  0xc6   : > { %413 = vadd.xlane.f32.xlu0 %v412_v17  ;;  %v436_v19 = vadd.f32 %v427_v18, %v426_v16  ;;  %v2005_v16 = vld [vmem:[%s2483_s4 + $0x10] sm:$0xff] }
  0xc8   : > { %437 = vadd.xlane.f32.xlu1 %v436_v19 }
  0xca   : > { %v1969_v20 = vpop.f32.mrf.mxu2 }
  0xcb   : > { %v1971_v21 = vpop.f32.mrf.mxu3  ;;  %v428_v22 = vmul.f32 %v1969_v20, %v1969_v20 }
  0xcc   : > { %v415_v23 = vadd.f32 %v1971_v21, %v1969_v20  ;;  %v429_v24 = vmul.f32 %v1971_v21, %v1971_v21 }
  0xce   : > { %416 = vadd.xlane.f32.xlu0 %v415_v23  ;;  %v439_v25 = vadd.f32 %v429_v24, %v428_v22 }
  0xd0   : > { %440 = vadd.xlane.f32.xlu1 %v439_v25 }
  0xd6   : > { %431 = vadd.xlane.f32.xlu0 %v430_v30 }
  0xd8   : > { %434 = vadd.xlane.f32.xlu1 %v433_v31  ;;  %v2012_v31 = vld [vmem:[%s2483_s4 + $0x18] sm:$0xff] }
 0x129   : > { %v408_v34 = vpop.xlane.xlu2 %407 }
 0x12a   : > { %v1991_v47 = vmul.f32 0.00390625, %v408_v34 }
 0x12c   : > { %v446_v54 = vmul.f32 %v1991_v47, %v1991_v47 }
 0x131   : > { %v411_v46 = vpop.xlane.xlu2 %410 }
 0x132   : > { %v1993_v49 = vmul.f32 0.00390625, %v411_v46 }
 0x134   : > { %v447_v59 = vmul.f32 %v1993_v49, %v1993_v49 }
 0x139   : > { %v414_v32 = vpop.xlane.xlu0 %413 }
 0x13a   : > { %v420_v33 = vmul.f32 0.00390625, %v414_v32 }
 0x13b   : > { %v438_v35 = vpop.xlane.xlu1 %437 }
 0x13c   : > { %v448_v36 = vmul.f32 %v420_v33, %v420_v33  ;;  %v444_v37 = vmul.f32 0.00390625, %v438_v35 }
 0x13e   : > { %v452_v38 = vsub.f32 %v444_v37, %v448_v36 }
 0x140   : > { %v456_v39 = vmax.f32 %v452_v38, 0.0 }
 0x141   : > { %v417_v40 = vpop.xlane.xlu0 %416 }
 0x142   : > { %v460_v41 = vadd.f32 1e-05, %v456_v39  ;;  %v1987_v42 = vmul.f32 0.00390625, %v417_v40 }
 0x143   : > { %v441_v43 = vpop.xlane.xlu1 %440 }
 0x144   : > { %1655 = vrsqrt.f32 %v460_v41  ;;  %v449_v44 = vmul.f32 %v1987_v42, %v1987_v42  ;;  %v445_v45 = vmul.f32 0.00390625, %v441_v43  ;;  %vm488_vm2 = vweird.f32 %v460_v41 }
 0x146   : > { %v453_v48 = vsub.f32 %v445_v45, %v449_v44  ;;  %v2025_v45 = vld [vmem:[%s2483_s4 + $0x8] sm:$0xff] }
 0x148   : > { %v457_v50 = vmax.f32 %v453_v48, 0.0 }
 0x149   : > { %v432_v51 = vpop.xlane.xlu0 %431 }
 0x14a   : > { %v1656_v53 = vpop.eup %1655  ;;  %v461_v55 = vadd.f32 1e-05, %v457_v50  ;;  %v442_v56 = vmul.f32 0.00390625, %v432_v51 }
 0x14b   : > { %v483_v57 = vmul.f32 %v1656_v53, %v460_v41  ;;  %v435_v58 = vpop.xlane.xlu1 %434  ;;  %vm489_vm1 = vweird.f32 %v1656_v53  ;;  %v2019_v41 = vld [vmem:[%s2483_s4] sm:$0xff] }
 0x14c   : > { %1657 = vrsqrt.f32 %v461_v55  ;;  %v450_v60 = vsub.f32 %v442_v56, %v446_v54  ;;  %v443_v61 = vmul.f32 0.00390625, %v435_v58  ;;  %vm490_vm3 = vmor %vm488_vm2, %vm489_vm1  ;;  %vm498_vm5 = vweird.f32 %v461_v55 }
 0x14d   : > { %v484_v62 = vmul.f32 %v1656_v53, %v483_v57  ;;  %v1793_v54 = vmov 2   ;;  %v1563_v57 = vld [vmem:[%s2480_s1] sm:$0xff] }
 0x14e   : > { %v454_v63 = vmax.f32 %v450_v60, 0.0  ;;  %v451_v0 = vsub.f32 %v443_v61, %v447_v59  ;;  %1497 = vmatmul.msk.bf16.vlgmr.msra.gmra.mxu0 %vm307_vm0, %v1563_v57  ;;  %1499 = vmatmul.msk.bf16.vlgmr.msra.gmra.mxu1 %vm307_vm0, %v1563_v57 }
 0x14f   : > { %v485_v1 = vmul.f32 0.5, %v484_v62  ;;  %v1564_v62 = vld [vmem:[%s2480_s1 + $0x8] sm:$0xff] }
 0x150   : > { %v458_v2 = vadd.f32 1e-05, %v454_v63  ;;  %v455_v3 = vmax.f32 %v451_v0, 0.0 }
 0x151   : > { %v486_v4 = vsub.f32 1.5, %v485_v1 }
 0x152   : > { %v1658_v5 = vpop.eup %1657  ;;  %1659 = vrsqrt.f32 %v458_v2  ;;  %v459_v10 = vadd.f32 1e-05, %v455_v3  ;;  %vm468_vm8 = vweird.f32 %v458_v2 }
 0x153   : > { %v493_v13 = vmul.f32 %v1658_v5, %v461_v55  ;;  %v487_v17 = vmul.f32 %v1656_v53, %v486_v4  ;;  %vm499_vm4 = vweird.f32 %v1658_v5 }
 0x154   : > { %1661 = vrsqrt.f32 %v459_v10  ;;  %vm500_vm6 = vmor %vm498_vm5, %vm499_vm4  ;;  %vm478_vm11 = vweird.f32 %v459_v10 }
 0x155   : > { %v494_v18 = vmul.f32 %v1658_v5, %v493_v13  ;;  %v491_v19 = vsel %vm490_vm3, %v1656_v53, %v487_v17 }
 0x156   : > { %v504_v22 = vmul.f32 %v491_v19, %v2005_v16 }
 0x157   : > { %v495_v23 = vmul.f32 0.5, %v494_v18 }
 0x158   : > { %v1660_v24 = vpop.eup %1659  ;;  %v508_v25 = vmul.f32 %v504_v22, %v420_v33 }
 0x159   : > { %v496_v26 = vsub.f32 1.5, %v495_v23  ;;  %v463_v27 = vmul.f32 %v1660_v24, %v458_v2  ;;  %vm469_vm7 = vweird.f32 %v1660_v24 }
 0x15a   : > { %v1662_v28 = vpop.eup %1661  ;;  %518 = vrot.lane.b32.xlu2 %v508_v25, %s1792_s8  ;;  %vm470_vm10 = vmor %vm468_vm8, %vm469_vm7  ;;  %v1572_v25 = vld [vmem:[%s1919_s25 + $0x14] sm:$0xf0] }
 0x15b   : > { %v464_v29 = vmul.f32 %v1660_v24, %v463_v27  ;;  %v473_v30 = vmul.f32 %v1662_v28, %v459_v10  ;;  %v497_v32 = vmul.f32 %v1658_v5, %v496_v26  ;;  %vm479_vm9 = vweird.f32 %v1662_v28  ;;  %v1571_v26 = vld [vmem:[%s1919_s25 + $0x14] sm:$0xf] }
 0x15c   : > { %vm480_vm12 = vmor %vm478_vm11, %vm479_vm9 }
 0x15d   : > { %v465_v34 = vmul.f32 0.5, %v464_v29  ;;  %v474_v35 = vmul.f32 %v1662_v28, %v473_v30  ;;  %v501_v33 = vsel %vm500_vm6, %v1658_v5, %v497_v32  ;;  %v1531_v30 = vld [vmem:[%s1919_s25 + $0x18] sm:$0xf0] }
 0x15e   : > { %v505_v36 = vmul.f32 %v501_v33, %v2012_v31  ;;  %1498 = vmatmul.msk.bf16.gmra.mxu0 %vm307_vm0, %v1564_v62  ;;  %1500 = vmatmul.msk.bf16.gmra.mxu1 %vm307_vm0, %v1564_v62  ;;  %v1534_v32 = vor.u32 %v1571_v26, %v1531_v30 }
 0x15f   : > { %v466_v37 = vsub.f32 1.5, %v465_v34  ;;  %v475_v38 = vmul.f32 0.5, %v474_v35 }
 0x160   : > { %v509_v39 = vmul.f32 %v505_v36, %v1987_v42  ;;  %896 = vmatpush.bf16.msrb.mxu3 %v1534_v32 }
 0x161   : > { %v476_v40 = vsub.f32 1.5, %v475_v38  ;;  %v467_v43 = vmul.f32 %v1660_v24, %v466_v37 }
 0x162   : > { %520 = vrot.lane.b32.xlu0 %v509_v39, %s1792_s8 }
 0x163   : > { %v471_v44 = vsel %vm470_vm10, %v1660_v24, %v467_v43  ;;  %v477_v42 = vmul.f32 %v1662_v28, %v476_v40  ;;  %v1529_v24 = vld [vmem:[%s1919_s25 + $0x10] sm:$0xf]  ;;  %1537 = vmatmul.msk.bf16.vlgmr.msrb.gmra.mxu3 %vm307_vm0, %v1563_v57 }
 0x164   : > { %v502_v46 = vmul.f32 %v471_v44, %v2019_v41 }
 0x165   : > { %v481_v48 = vsel %vm480_vm12, %v1662_v28, %v477_v42 }
 0x166   : > { %v506_v50 = vmul.f32 %v502_v46, %v1991_v47  ;;  %v503_v51 = vmul.f32 %v481_v48, %v2025_v45 }
 0x168   : > { %514 = vrot.lane.b32.xlu1 %v506_v50, %s1792_s8  ;;  %v507_v53 = vmul.f32 %v503_v51, %v1993_v49  ;;  %v2080_v50 = vld [vmem:[%s2482_s3 + $0x8] sm:$0xff] }
 0x16a   : > { %542 = vperm.xlu0 %1631, %v504_v22   ;;  %516 = vrot.lane.b32.xlu2 %v507_v53, %s1792_s8 }
 0x170   : > { %532 = vperm.xlu1 %1633, %v502_v46  }
 0x172   : > { %537 = vperm.xlu0 %1631, %v503_v51   ;;  %547 = vperm.xlu2 %1632, %v505_v36  }
 0x173   : > { %1538 = vmatmul.msk.bf16.gmra.mxu3 %vm307_vm0, %v1564_v62 }
 0x178   : > { %1634 = vset.pattern.permute.xlu1 %v1793_v54 }
 0x17a   : > { %1635 = vset.pattern.permute.xlu2 %v1793_v54  ;;  %1638 = vset.pattern.permute.xlu0 %v1793_v54 }
 0x1b4   : > { %v519_v47 = vpop.permute.xlu2 %518 }
 0x1b5   : > { %v528_v55 = vsub.f32 %v2005_v16, %v519_v47 }
 0x1b7   : > { %570 = vperm.xlu1 %1634, %v528_v55  }
 0x1c4   : > { %v517_v56 = vpop.permute.xlu2 %516 }
 0x1c5   : > { %v527_v49 = vsub.f32 %v2025_v45, %v517_v56 }
 0x1c7   : > { %565 = vperm.xlu1 %1634, %v527_v49  }
 0x1cb   : > { %v2094_v51 = vpop.f32.mrf.mxu0  ;;  %v2096_v53 = vpop.f32.mrf.mxu1 }
 0x1cc   : > { %v548_v0 = vpop.permute.xlu2 %547 }
 0x1cd   : > { %v556_v10 = vmul.f32 %v548_v0, %v1969_v20  ;;  %v557_v13 = vmul.f32 %v548_v0, %v1971_v21 }
 0x1cf   : > { %1636 = vset.pattern.permute.xlu1 %v1791_v52 }
 0x1d3   : > { %v2098_v47 = vpop.f32.mrf.mxu0  ;;  %v2100_v55 = vpop.f32.mrf.mxu1 }
 0x1d4   : > { %v521_v58 = vpop.permute.xlu0 %520 }
 0x1d5   : > { %v529_v59 = vsub.f32 %v2012_v31, %v521_v58 }
 0x1d7   : > { %575 = vperm.xlu2 %1635, %v529_v59  }
 0x1da   : > { %v515_v60 = vpop.permute.xlu1 %514 }
 0x1db   : > { %v526_v61 = vsub.f32 %v2019_v41, %v515_v60  ;;  %v2102_v56 = vpop.f32.mrf.mxu0  ;;  %v2104_v49 = vpop.f32.mrf.mxu1 }
 0x1dc   : > { %v543_v1 = vpop.permute.xlu0 %542 }
 0x1dd   : > { %v554_v3 = vmul.f32 %v543_v1, %v1959_v14  ;;  %v555_v4 = vmul.f32 %v543_v1, %v1961_v15  ;;  %v1530_v14 = vor.u32 %v1572_v25, %v1529_v24 }
 0x1df   : > { %560 = vperm.xlu2 %1635, %v526_v61   ;;  %877 = vmatpush.bf16.msrb.mxu2 %v1530_v14 }
 0x1e2   : > { %v533_v63 = vpop.permute.xlu1 %532  ;;  %1535 = vmatmul.msk.bf16.vlgmr.msrb.gmra.mxu2 %vm307_vm0, %v1563_v57 }
 0x1e3   : > { %v550_v20 = vmul.f32 %v533_v63, %v1947_v8  ;;  %v551_v21 = vmul.f32 %v533_v63, %v1949_v9  ;;  %v2106_v57 = vpop.f32.mrf.mxu0 }
 0x1e4   : > { %v538_v15 = vpop.permute.xlu0 %537 }
 0x1e5   : > { %v552_v33 = vmul.f32 %v538_v15, %v1953_v11  ;;  %v553_v36 = vmul.f32 %v538_v15, %v1955_v12  ;;  %v2069_v12 = vld [vmem:[%s2482_s3] sm:$0xff] }
 0x1e7   : > { %1637 = vset.pattern.permute.xlu2 %v1791_v52 }
 0x1f2   : > { %1536 = vmatmul.msk.bf16.gmra.mxu2 %vm307_vm0, %v1564_v62 }
 0x229   : > { %v571_v2 = vpop.permute.xlu1 %570 }
 0x22a   : > { %v582_v5 = vadd.f32 %v571_v2, %v554_v3  ;;  %v583_v17 = vadd.f32 %v571_v2, %v555_v4 }
 0x22c   : > { %v590_v19 = vmax.f32 %v582_v5, 0.0  ;;  %v591_v27 = vmax.f32 %v583_v17, 0.0 }
 0x231   : > { %v576_v18 = vpop.permute.xlu2 %575 }
 0x232   : > { %v584_v22 = vadd.f32 %v576_v18, %v556_v10  ;;  %v585_v23 = vadd.f32 %v576_v18, %v557_v13 }
 0x234   : > { %v592_v28 = vmax.f32 %v584_v22, 0.0  ;;  %v593_v29 = vmax.f32 %v585_v23, 0.0 }
 0x236   : > { %v596_v34 = vpack.c.bf16 %v592_v28, %v590_v19  ;;  %v597_v35 = vpack.c.bf16 %v593_v29, %v591_v27 }
 0x238   : > { %621 = vmatpush.bf16.msrb.mxu0 %v596_v34  ;;  %640 = vmatpush.bf16.msrb.mxu1 %v597_v35 }
 0x239   : > { %v561_v37 = vpop.permute.xlu2 %560  ;;  %v566_v38 = vpop.permute.xlu1 %565 }
 0x23a   : > { %v578_v39 = vadd.f32 %v561_v37, %v550_v20  ;;  %v579_v40 = vadd.f32 %v561_v37, %v551_v21  ;;  %v580_v43 = vadd.f32 %v566_v38, %v552_v33  ;;  %v581_v44 = vadd.f32 %v566_v38, %v553_v36 }
 0x23c   : > { %v586_v8 = vmax.f32 %v578_v39, 0.0  ;;  %v587_v42 = vmax.f32 %v579_v40, 0.0  ;;  %v588_v46 = vmax.f32 %v580_v43, 0.0  ;;  %v589_v9 = vmax.f32 %v581_v44, 0.0 }
 0x23e   : > { %v594_v48 = vpack.c.bf16 %v588_v46, %v586_v8  ;;  %v595_v11 = vpack.c.bf16 %v589_v9, %v587_v42 }
 0x240   : > { %622 = vmatpush.bf16.msrb.mxu0 %v594_v48  ;;  %641 = vmatpush.bf16.msrb.mxu1 %v595_v11 }
 0x243   : > { %1521 = vmatmul.msk.bf16.vlgmr.msrb.gmra.mxu0 %vm608_vm13, %v2069_v12  ;;  %1523 = vmatmul.msk.bf16.vlgmr.msrb.gmra.mxu1 %vm608_vm13, %v2069_v12 }
 0x244   : > { %915 = vmatpush.bf16.msra.mxu0 %v1530_v14  ;;  %934 = vmatpush.bf16.msra.mxu1 %v1534_v32 }
 0x253   : > { %1522 = vmatmul.msk.bf16.gmra.mxu0 %vm608_vm13, %v2080_v50  ;;  %1524 = vmatmul.msk.bf16.gmra.mxu1 %vm608_vm13, %v2080_v50 }
 0x263   : > { %1539 = vmatmul.msk.bf16.vlgmr.msra.gmra.mxu0 %vm307_vm0, %v1932_v6  ;;  %1541 = vmatmul.msk.bf16.vlgmr.msra.gmra.mxu1 %vm307_vm0, %v1932_v6  ;;  %v2108_v6 = vpop.f32.mrf.mxu1 }
 0x273   : > { %1540 = vmatmul.msk.bf16.gmra.mxu0 %vm307_vm0, %v1941_v7  ;;  %1542 = vmatmul.msk.bf16.gmra.mxu1 %vm307_vm0, %v1941_v7 }
 0x2c0   : > { %v2110_v58 = vpop.f32.mrf.mxu0  ;;  %v2112_v59 = vpop.f32.mrf.mxu1 }
 0x2c8   : > { %v2114_v7 = vpop.f32.mrf.mxu0  ;;  %v2116_v60 = vpop.f32.mrf.mxu1 }
 0x2d0   : > { %v2118_v61 = vpop.f32.mrf.mxu0  ;;  %v2120_v62 = vpop.f32.mrf.mxu1 }
 0x2d8   : > { %v2122_v63 = vpop.f32.mrf.mxu0  ;;  %v2124_v0 = vpop.f32.mrf.mxu1 }
 0x2e0   : > { %v2126_v1 = vpop.f32.mrf.mxu0  ;;  %v2128_v2 = vpop.f32.mrf.mxu1 }
 0x2e1   : > { %v946_v3 = vadd.f32 %v2128_v2, %v2126_v1  ;;  %v962_v15 = vmul.f32 %v2126_v1, %v2126_v1  ;;  %v963_v32 = vmul.f32 %v2128_v2, %v2128_v2 }
 0x2e3   : > { %947 = vadd.xlane.f32.xlu2 %v946_v3  ;;  %v970_v35 = vadd.f32 %v963_v32, %v962_v15 }
 0x2e8   : > { %v2132_v4 = vpop.f32.mrf.mxu0  ;;  %v2134_v5 = vpop.f32.mrf.mxu1 }
 0x2e9   : > { %v949_v28 = vadd.f32 %v2134_v5, %v2132_v4  ;;  %v964_v14 = vmul.f32 %v2132_v4, %v2132_v4  ;;  %v965_v30 = vmul.f32 %v2134_v5, %v2134_v5 }
 0x2eb   : > { %v973_v34 = vadd.f32 %v965_v30, %v964_v14 }
 0x2f0   : > { %v2136_v10 = vpop.f32.mrf.mxu0  ;;  %v2138_v13 = vpop.f32.mrf.mxu1 }
 0x2f1   : > { %v952_v17 = vadd.f32 %v2138_v13, %v2136_v10  ;;  %v966_v18 = vmul.f32 %v2136_v10, %v2136_v10  ;;  %v967_v19 = vmul.f32 %v2138_v13, %v2138_v13 }
 0x2f3   : > { %953 = vadd.xlane.f32.xlu0 %v952_v17  ;;  %v976_v22 = vadd.f32 %v967_v19, %v966_v18 }
 0x2f5   : > { %977 = vadd.xlane.f32.xlu1 %v976_v22 }
 0x2f8   : > { %v2146_v23 = vpop.f32.mrf.mxu0  ;;  %v2148_v24 = vpop.f32.mrf.mxu1 }
 0x2f9   : > { %v968_v25 = vmul.f32 %v2146_v23, %v2146_v23  ;;  %v969_v26 = vmul.f32 %v2148_v24, %v2148_v24  ;;  %v955_v27 = vadd.f32 %v2148_v24, %v2146_v23 }
 0x2fb   : > { %956 = vadd.xlane.f32.xlu2 %v955_v27  ;;  %v979_v29 = vadd.f32 %v969_v26, %v968_v25 }
 0x2fd   : > { %950 = vadd.xlane.f32.xlu1 %v949_v28  ;;  %980 = vadd.xlane.f32.xlu0 %v979_v29 }
 0x303   : > { %974 = vadd.xlane.f32.xlu2 %v973_v34 }
 0x305   : > { %971 = vadd.xlane.f32.xlu0 %v970_v35 }
 0x356   : > { %v948_v20 = vpop.xlane.xlu2 %947 }
 0x357   : > { %v2172_v17 = vmul.f32 0.00390625, %v948_v20 }
 0x359   : > { %v986_v14 = vmul.f32 %v2172_v17, %v2172_v17 }
 0x366   : > { %v954_v21 = vpop.xlane.xlu0 %953 }
 0x367   : > { %v960_v33 = vmul.f32 0.00390625, %v954_v21 }
 0x368   : > { %v978_v36 = vpop.xlane.xlu1 %977 }
 0x369   : > { %v988_v37 = vmul.f32 %v960_v33, %v960_v33  ;;  %v984_v38 = vmul.f32 0.00390625, %v978_v36 }
 0x36b   : > { %v992_v39 = vsub.f32 %v984_v38, %v988_v37 }
 0x36d   : > { %v996_v40 = vmax.f32 %v992_v39, 0.0 }
 0x36e   : > { %v957_v43 = vpop.xlane.xlu2 %956 }
 0x36f   : > { %v1000_v44 = vadd.f32 1e-05, %v996_v40  ;;  %v2166_v8 = vmul.f32 0.00390625, %v957_v43 }
 0x370   : > { %v951_v42 = vpop.xlane.xlu1 %950  ;;  %v981_v46 = vpop.xlane.xlu0 %980 }
 0x371   : > { %1663 = vrsqrt.f32 %v1000_v44  ;;  %v989_v9 = vmul.f32 %v2166_v8, %v2166_v8  ;;  %v985_v48 = vmul.f32 0.00390625, %v981_v46  ;;  %v2170_v11 = vmul.f32 0.00390625, %v951_v42 }
 0x372   : > { %vm1028_vm15 = vweird.f32 %v1000_v44 }
 0x373   : > { %v993_v3 = vsub.f32 %v985_v48, %v989_v9  ;;  %v987_v25 = vmul.f32 %v2170_v11, %v2170_v11 }
 0x375   : > { %v997_v18 = vmax.f32 %v993_v3, 0.0 }
 0x376   : > { %v975_v19 = vpop.xlane.xlu2 %974 }
 0x377   : > { %v1664_v22 = vpop.eup %1663  ;;  %v983_v26 = vmul.f32 0.00390625, %v975_v19  ;;  %v1001_v28 = vadd.f32 1e-05, %v997_v18 }
 0x378   : > { %v1023_v27 = vmul.f32 %v1664_v22, %v1000_v44  ;;  %v972_v29 = vpop.xlane.xlu0 %971  ;;  %vm1029_vm14 = vweird.f32 %v1664_v22 }
 0x379   : > { %v991_v30 = vsub.f32 %v983_v26, %v987_v25  ;;  %v982_v15 = vmul.f32 0.00390625, %v972_v29  ;;  %1665 = vrsqrt.f32 %v1001_v28  ;;  %vm1030_vm0 = vmor %vm1028_vm15, %vm1029_vm14  ;;  %vm1038_vm2 = vweird.f32 %v1001_v28 }
 0x37a   : > { %v1024_v32 = vmul.f32 %v1664_v22, %v1023_v27 }
 0x37b   : > { %v995_v34 = vmax.f32 %v991_v30, 0.0  ;;  %v990_v35 = vsub.f32 %v982_v15, %v986_v14 }
 0x37c   : > { %v1025_v20 = vmul.f32 0.5, %v1024_v32 }
 0x37d   : > { %v999_v21 = vadd.f32 1e-05, %v995_v34  ;;  %v994_v36 = vmax.f32 %v990_v35, 0.0 }
 0x37e   : > { %v1026_v37 = vsub.f32 1.5, %v1025_v20 }
 0x37f   : > { %1667 = vrsqrt.f32 %v999_v21  ;;  %v998_v38 = vadd.f32 1e-05, %v994_v36  ;;  %v1666_v39 = vpop.eup %1665  ;;  %vm1018_vm5 = vweird.f32 %v999_v21 }
 0x380   : > { %v1027_v40 = vmul.f32 %v1664_v22, %v1026_v37  ;;  %v1033_v43 = vmul.f32 %v1666_v39, %v1001_v28  ;;  %vm1039_vm1 = vweird.f32 %v1666_v39 }
 0x381   : > { %1669 = vrsqrt.f32 %v998_v38  ;;  %vm1040_vm3 = vmor %vm1038_vm2, %vm1039_vm1  ;;  %vm1008_vm8 = vweird.f32 %v998_v38 }
 0x382   : > { %v1031_v42 = vsel %vm1030_vm0, %v1664_v22, %v1027_v40  ;;  %v1034_v46 = vmul.f32 %v1666_v39, %v1033_v43 }
 0x383   : > { %v1044_v9 = vmul.f32 %v1031_v42, %v2005_v16 }
 0x384   : > { %v1035_v3 = vmul.f32 0.5, %v1034_v46 }
 0x385   : > { %v1668_v48 = vpop.eup %1667  ;;  %v1048_v18 = vmul.f32 %v1044_v9, %v960_v33 }
 0x386   : > { %v1013_v19 = vmul.f32 %v1668_v48, %v999_v21  ;;  %v1036_v26 = vsub.f32 1.5, %v1035_v3  ;;  %vm1019_vm4 = vweird.f32 %v1668_v48 }
 0x387   : > { %v1670_v25 = vpop.eup %1669  ;;  %1058 = vrot.lane.b32.xlu1 %v1048_v18, %s1792_s8  ;;  %vm1020_vm7 = vmor %vm1018_vm5, %vm1019_vm4  ;;  %v662_v18 = vadd.f32 %v2124_v0, %v2122_v63 }
 0x388   : > { %v1014_v27 = vmul.f32 %v1668_v48, %v1013_v19  ;;  %v1003_v29 = vmul.f32 %v1670_v25, %v998_v38  ;;  %v1037_v44 = vmul.f32 %v1666_v39, %v1036_v26  ;;  %vm1009_vm6 = vweird.f32 %v1670_v25 }
 0x389   : > { %vm1010_vm9 = vmor %vm1008_vm8, %vm1009_vm6  ;;  %v672_v19 = vmul.f32 %v2116_v60, %v2116_v60  ;;  %v659_v26 = vadd.f32 %v2120_v62, %v2118_v61 }
 0x38a   : > { %v1015_v14 = vmul.f32 0.5, %v1014_v27  ;;  %v1004_v30 = vmul.f32 %v1670_v25, %v1003_v29  ;;  %v1041_v22 = vsel %vm1040_vm3, %v1666_v39, %v1037_v44  ;;  %v673_v27 = vmul.f32 %v2118_v61, %v2118_v61 }
 0x38b   : > { %v1045_v34 = vmul.f32 %v1041_v22, %v2012_v31  ;;  %v674_v29 = vmul.f32 %v2120_v62, %v2120_v62  ;;  %v670_v22 = vmul.f32 %v2112_v59, %v2112_v59 }
 0x38c   : > { %v1016_v15 = vsub.f32 1.5, %v1015_v14  ;;  %v1005_v32 = vmul.f32 0.5, %v1004_v30  ;;  %v656_v14 = vadd.f32 %v2116_v60, %v2114_v7  ;;  %v669_v30 = vmul.f32 %v2110_v58, %v2110_v58 }
 0x38d   : > { %v1049_v35 = vmul.f32 %v1045_v34, %v2166_v8  ;;  %v683_v44 = vadd.f32 %v674_v29, %v673_v27 }
 0x38e   : > { %v1006_v33 = vsub.f32 1.5, %v1005_v32  ;;  %v1017_v20 = vmul.f32 %v1668_v48, %v1016_v15  ;;  %v677_v15 = vadd.f32 %v670_v22, %v669_v30  ;;  %v675_v32 = vmul.f32 %v2122_v63, %v2122_v63 }
 0x38f   : > { %1082 = vperm.xlu1 %1636, %v1044_v9   ;;  %1060 = vrot.lane.b32.xlu0 %v1049_v35, %s1792_s8 }
 0x390   : > { %v1007_v28 = vmul.f32 %v1670_v25, %v1006_v33  ;;  %v1021_v36 = vsel %vm1020_vm7, %v1668_v48, %v1017_v20 }
 0x391   : > { %v1043_v39 = vmul.f32 %v1021_v36, %v2025_v45  ;;  %v879_v36 = vpop.f32.mrf.mxu2 }
 0x392   : > { %v1011_v37 = vsel %vm1010_vm9, %v1670_v25, %v1007_v28 }
 0x393   : > { %v1042_v40 = vmul.f32 %v1011_v37, %v2019_v41  ;;  %v1047_v43 = vmul.f32 %v1043_v39, %v2170_v11 }
 0x395   : > { %v1046_v21 = vmul.f32 %v1042_v40, %v2172_v17  ;;  %v1794_v17 = vmov 0  }
 0x397   : > { %1054 = vrot.lane.b32.xlu2 %v1046_v21, %s1792_s8  ;;  %1639 = vset.pattern.permute.xlu1 %v1793_v54 }
 0x398   : > { %1056 = vrot.lane.b32.xlu0 %v1047_v43, %s1792_s8 }
 0x39f   : > { %1087 = vperm.xlu2 %1637, %v1045_v34   ;;  %v676_v34 = vmul.f32 %v2124_v0, %v2124_v0 }
 0x3a1   : > { %v686_v33 = vadd.f32 %v676_v34, %v675_v32 }
 0x3a7   : > { %1072 = vperm.xlu2 %1637, %v1042_v40   ;;  %v898_v40 = vpop.f32.mrf.mxu3 }
 0x3af   : > { %1641 = vset.pattern.permute.xlu2 %v1793_v54  ;;  %v653_v54 = vadd.f32 %v2112_v59, %v2110_v58 }
 0x3f1   : > { %v1055_v8 = vpop.permute.xlu2 %1054 }
 0x3f2   : > { %v1066_v38 = vsub.f32 %v2019_v41, %v1055_v8 }
 0x3f4   : > { %1100 = vperm.xlu2 %1641, %v1066_v38  }
 0x3f9   : > { %v1059_v42 = vpop.permute.xlu1 %1058  ;;  %v1088_v35 = vpop.permute.xlu2 %1087 }
 0x3fa   : > { %v1068_v46 = vsub.f32 %v2005_v16, %v1059_v42  ;;  %v1096_v21 = vmul.f32 %v1088_v35, %v2146_v23  ;;  %v1097_v43 = vmul.f32 %v1088_v35, %v2148_v24  ;;  %v2230_v23 = vpop.f32.mrf.mxu3 }
 0x3fc   : > { %1110 = vperm.xlu0 %1638, %v1068_v46   ;;  %1643 = vset.pattern.permute.xlu2 %v1794_v17 }
 0x3fd   : > { %274 = vperm.xlu2 %1643, %v2025_v45  }
 0x401   : > { %v1061_v11 = vpop.permute.xlu0 %1060  ;;  %v1083_v20 = vpop.permute.xlu1 %1082 }
 0x402   : > { %v1069_v9 = vsub.f32 %v2012_v31, %v1061_v11  ;;  %v1094_v37 = vmul.f32 %v1083_v20, %v2136_v10  ;;  %v1073_v8 = vpop.permute.xlu2 %1072  ;;  %v2228_v10 = vpop.f32.mrf.mxu2 }
 0x403   : > { %v1090_v24 = vmul.f32 %v1073_v8, %v2126_v1 }
 0x404   : > { %1115 = vperm.xlu1 %1639, %v1069_v9  }
 0x40a   : > { %v1057_v48 = vpop.permute.xlu0 %1056 }
 0x40b   : > { %v1067_v3 = vsub.f32 %v2025_v45, %v1057_v48 }
 0x40c   : > { %1640 = vset.pattern.permute.xlu1 %v1791_v52  ;;  %v671_v52 = vmul.f32 %v2114_v7, %v2114_v7 }
 0x40d   : > { %1105 = vperm.xlu0 %1638, %v1067_v3   ;;  %1077 = vperm.xlu1 %1640, %v1043_v39   ;;  %v1095_v39 = vmul.f32 %v1083_v20, %v2138_v13 }
 0x40e   : > { %v680_v25 = vadd.f32 %v672_v19, %v671_v52  ;;  %v1091_v19 = vmul.f32 %v1073_v8, %v2128_v2  ;;  %v903_v2 = vpop.f32.mrf.mxu3 }
 0x415   : > { %1644 = vset.pattern.permute.xlu0 %v1794_v17  ;;  %1642 = vset.pattern.permute.xlu1 %v1794_v17 }
 0x416   : > { %279 = vperm.xlu0 %1644, %v2005_v16   ;;  %269 = vperm.xlu1 %1642, %v2019_v41  }
 0x41e   : > { %284 = vperm.xlu1 %1642, %v2012_v31  }
 0x426   : > { %654 = vadd.xlane.f32.xlu2 %v653_v54 }
 0x42e   : > { %663 = vadd.xlane.f32.xlu2 %v662_v18 }
 0x436   : > { %681 = vadd.xlane.f32.xlu2 %v680_v25 }
 0x440   : > { %660 = vadd.xlane.f32.xlu0 %v659_v26 }
 0x448   : > { %684 = vadd.xlane.f32.xlu0 %v683_v44  ;;  %657 = vadd.xlane.f32.xlu1 %v656_v14 }
 0x44e   : > { %v1101_v13 = vpop.permute.xlu2 %1100 }
 0x44f   : > { %v1118_v27 = vadd.f32 %v1101_v13, %v1090_v24  ;;  %v1119_v29 = vadd.f32 %v1101_v13, %v1091_v19 }
 0x450   : > { %678 = vadd.xlane.f32.xlu1 %v677_v15 }
 0x451   : > { %v1126_v15 = vmax.f32 %v1118_v27, 0.0  ;;  %v1127_v32 = vmax.f32 %v1119_v29, 0.0 }
 0x458   : > { %687 = vadd.xlane.f32.xlu1 %v686_v33 }
 0x46e   : > { %v1111_v28 = vpop.permute.xlu0 %1110 }
 0x46f   : > { %v1122_v38 = vadd.f32 %v1111_v28, %v1094_v37  ;;  %v1123_v42 = vadd.f32 %v1111_v28, %v1095_v39  ;;  %v884_v28 = vpop.f32.mrf.mxu2 }
 0x471   : > { %v1130_v9 = vmax.f32 %v1122_v38, 0.0  ;;  %v1131_v48 = vmax.f32 %v1123_v42, 0.0 }
 0x476   : > { %v1116_v46 = vpop.permute.xlu1 %1115 }
 0x477   : > { %v1124_v17 = vadd.f32 %v1116_v46, %v1096_v21  ;;  %v1125_v11 = vadd.f32 %v1116_v46, %v1097_v43  ;;  %v2260_v43 = vpop.permute.xlu2 %274 }
 0x479   : > { %v1132_v3 = vmax.f32 %v1124_v17, 0.0  ;;  %v1133_v54 = vmax.f32 %v1125_v11, 0.0 }
 0x47b   : > { %v1136_v18 = vpack.c.bf16 %v1132_v3, %v1130_v9  ;;  %v1137_v52 = vpack.c.bf16 %v1133_v54, %v1131_v48 }
 0x47d   : > { %1144 = vmatpush.bf16.msra.mxu2 %v1136_v18  ;;  %1163 = vmatpush.bf16.msra.mxu3 %v1137_v52 }
 0x47f   : > { %v1106_v25 = vpop.permute.xlu0 %1105  ;;  %v1078_v26 = vpop.permute.xlu1 %1077 }
 0x480   : > { %v1092_v44 = vmul.f32 %v1078_v26, %v2132_v4  ;;  %v1093_v14 = vmul.f32 %v1078_v26, %v2134_v5 }
 0x482   : > { %v1120_v30 = vadd.f32 %v1106_v25, %v1092_v44  ;;  %v1121_v22 = vadd.f32 %v1106_v25, %v1093_v14 }
 0x484   : > { %v1128_v34 = vmax.f32 %v1120_v30, 0.0  ;;  %v1129_v33 = vmax.f32 %v1121_v22, 0.0 }
 0x486   : > { %v1134_v35 = vpack.c.bf16 %v1128_v34, %v1126_v15  ;;  %v1135_v20 = vpack.c.bf16 %v1129_v33, %v1127_v32 }
 0x488   : > { %v2236_v1 = vpop.permute.xlu0 %279  ;;  %v2238_v37 = vpop.permute.xlu1 %269  ;;  %1145 = vmatpush.bf16.msra.mxu2 %v1134_v35  ;;  %1164 = vmatpush.bf16.msra.mxu3 %v1135_v20 }
 0x489   : > { %v2241_v4 = vadd.f32 %v884_v28, %v2236_v1  ;;  %v2244_v5 = vadd.f32 %v903_v2, %v2236_v1  ;;  %v2247_v39 = vadd.f32 %v879_v36, %v2238_v37  ;;  %v2250_v21 = vadd.f32 %v898_v40, %v2238_v37 }
 0x48b   : > { %1543 = vmatmul.msk.bf16.vlgmr.msra.gmra.mxu2 %vm608_vm13, %v2069_v12  ;;  %1545 = vmatmul.msk.bf16.vlgmr.msra.gmra.mxu3 %vm608_vm13, %v2069_v12 }
 0x490   : > { %v2264_v40 = vpop.permute.xlu1 %284 }
 0x499   : > { %v655_v8 = vpop.xlane.xlu2 %654 }
 0x49b   : > { %1544 = vmatmul.msk.bf16.gmra.mxu2 %vm608_vm13, %v2080_v50  ;;  %1546 = vmatmul.msk.bf16.gmra.mxu3 %vm608_vm13, %v2080_v50  ;;  %v665_v50 = vmul.f32 0.00390625, %v655_v8 }
 0x49d   : > { %v693_v26 = vmul.f32 %v665_v50, %v665_v50 }
 0x4a1   : > { %v2262_v36 = vpop.xlane.xlu2 %663 }
 0x4a9   : > { %v682_v17 = vpop.xlane.xlu2 %681 }
 0x4aa   : > { %v690_v54 = vmul.f32 0.00390625, %v682_v17 }
 0x4b3   : > { %v661_v38 = vpop.xlane.xlu0 %660 }
 0x4b4   : > { %v667_v42 = vmul.f32 0.00390625, %v661_v38 }
 0x4b6   : > { %v695_v11 = vmul.f32 %v667_v42, %v667_v42 }
 0x4bb   : > { %v685_v46 = vpop.xlane.xlu0 %684  ;;  %v658_v12 = vpop.xlane.xlu1 %657 }
 0x4bc   : > { %v691_v9 = vmul.f32 0.00390625, %v685_v46  ;;  %v666_v48 = vmul.f32 0.00390625, %v658_v12 }
 0x4be   : > { %v699_v3 = vsub.f32 %v691_v9, %v695_v11  ;;  %v694_v18 = vmul.f32 %v666_v48, %v666_v48 }
 0x4c0   : > { %v703_v52 = vmax.f32 %v699_v3, 0.0  ;;  %v698_v13 = vsub.f32 %v690_v54, %v694_v18 }
 0x4c2   : > { %v707_v24 = vadd.f32 1e-05, %v703_v52  ;;  %v702_v19 = vmax.f32 %v698_v13, 0.0 }
 0x4c3   : > { %v679_v25 = vpop.xlane.xlu1 %678 }
 0x4c4   : > { %1671 = vrsqrt.f32 %v707_v24  ;;  %v706_v27 = vadd.f32 1e-05, %v702_v19  ;;  %v689_v29 = vmul.f32 0.00390625, %v679_v25  ;;  %vm735_vm11 = vweird.f32 %v707_v24 }
 0x4c6   : > { %1673 = vrsqrt.f32 %v706_v27  ;;  %v697_v44 = vsub.f32 %v689_v29, %v693_v26  ;;  %vm725_vm14 = vweird.f32 %v706_v27 }
 0x4c8   : > { %v701_v14 = vmax.f32 %v697_v44, 0.0  ;;  %v668_v44 = vmul.f32 0.00390625, %v2262_v36 }
 0x4ca   : > { %v1672_v30 = vpop.eup %1671  ;;  %v705_v15 = vadd.f32 1e-05, %v701_v14 }
 0x4cb   : > { %v730_v22 = vmul.f32 %v1672_v30, %v707_v24  ;;  %vm736_vm10 = vweird.f32 %v1672_v30  ;;  %v688_v29 = vpop.xlane.xlu1 %687 }
 0x4cc   : > { %v1674_v32 = vpop.eup %1673  ;;  %1675 = vrsqrt.f32 %v705_v15  ;;  %vm737_vm12 = vmor %vm735_vm11, %vm736_vm10  ;;  %vm715_vm1 = vweird.f32 %v705_v15  ;;  %v692_v14 = vmul.f32 0.00390625, %v688_v29 }
 0x4cd   : > { %v731_v34 = vmul.f32 %v1672_v30, %v730_v22  ;;  %v720_v33 = vmul.f32 %v1674_v32, %v706_v27  ;;  %vm726_vm13 = vweird.f32 %v1674_v32 }
 0x4ce   : > { %vm727_vm15 = vmor %vm725_vm14, %vm726_vm13 }
 0x4cf   : > { %v732_v35 = vmul.f32 0.5, %v731_v34  ;;  %v721_v20 = vmul.f32 %v1674_v32, %v720_v33 }
 0x4d1   : > { %v733_v28 = vsub.f32 1.5, %v732_v35  ;;  %v722_v2 = vmul.f32 0.5, %v721_v20 }
 0x4d2   : > { %v1676_v8 = vpop.eup %1675 }
 0x4d3   : > { %v734_v38 = vmul.f32 %v1672_v30, %v733_v28  ;;  %v723_v46 = vsub.f32 1.5, %v722_v2  ;;  %v710_v17 = vmul.f32 %v1676_v8, %v705_v15  ;;  %vm716_vm0 = vweird.f32 %v1676_v8 }
 0x4d4   : > { %vm717_vm2 = vmor %vm715_vm1, %vm716_vm0 }
 0x4d5   : > { %v738_v11 = vsel %vm737_vm12, %v1672_v30, %v734_v38  ;;  %v724_v9 = vmul.f32 %v1674_v32, %v723_v46  ;;  %v711_v12 = vmul.f32 %v1676_v8, %v710_v17  ;;  %v2485_v46 = vmov 3  }
 0x4d6   : > { %v2267_v3 = vmul.f32 %v738_v11, %v2005_v16  ;;  %1646 = vset.pattern.permute.xlu2 %v2485_v46  ;;  %1645 = vset.pattern.permute.xlu0 %v2485_v46 }
 0x4d7   : > { %v728_v54 = vsel %vm727_vm15, %v1674_v32, %v724_v9  ;;  %v712_v18 = vmul.f32 0.5, %v711_v12  ;;  %1647 = vset.pattern.permute.xlu1 %v2485_v46 }
 0x4d8   : > { %v755_v52 = vmul.f32 %v2267_v3, %v667_v42  ;;  %v2271_v13 = vmul.f32 %v728_v54, %v2025_v45  ;;  %v2278_v42 = vpop.f32.mrf.mxu2  ;;  %v2280_v45 = vpop.f32.mrf.mxu3 }
 0x4d9   : > { %v713_v24 = vsub.f32 1.5, %v712_v18 }
 0x4da   : > { %765 = vrot.lane.b32.xlu1 %v755_v52, %s1792_s8  ;;  %v754_v19 = vmul.f32 %v2271_v13, %v666_v48  ;;  %v696_v48 = vmul.f32 %v668_v44, %v668_v44 }
 0x4db   : > { %v714_v25 = vmul.f32 %v1676_v8, %v713_v24 }
 0x4dc   : > { %763 = vrot.lane.b32.xlu0 %v754_v19, %s1792_s8  ;;  %v700_v34 = vsub.f32 %v692_v14, %v696_v48 }
 0x4dd   : > { %v718_v16 = vsel %vm717_vm2, %v1676_v8, %v714_v25 }
 0x4de   : > { %v749_v26 = vmul.f32 %v718_v16, %v2019_v41  ;;  %v704_v36 = vmax.f32 %v700_v34, 0.0 }
 0x4e0   : > { %v753_v27 = vmul.f32 %v749_v26, %v665_v50  ;;  %v708_v28 = vadd.f32 1e-05, %v704_v36 }
 0x4e2   : > { %761 = vrot.lane.b32.xlu2 %v753_v27, %s1792_s8  ;;  %1677 = vrsqrt.f32 %v708_v28  ;;  %vm745_vm4 = vweird.f32 %v708_v28 }
 0x4e8   : > { %v1678_v11 = vpop.eup %1677 }
 0x4e9   : > { %v740_v54 = vmul.f32 %v1678_v11, %v708_v28  ;;  %vm746_vm3 = vweird.f32 %v1678_v11 }
 0x4ea   : > { %vm747_vm5 = vmor %vm745_vm4, %vm746_vm3 }
 0x4eb   : > { %v741_v27 = vmul.f32 %v1678_v11, %v740_v54 }
 0x50e   : > { %v2283_v30 = vpop.f32.mrf.mxu2  ;;  %v2285_v22 = vpop.f32.mrf.mxu3 }
 0x50f   : > { %v1176_v15 = vadd.f32 %v2285_v22, %v2283_v30  ;;  %v1192_v50 = vmul.f32 %v2283_v30, %v2283_v30  ;;  %v1193_v32 = vmul.f32 %v2285_v22, %v2285_v22 }
 0x511   : > { %1177 = vadd.xlane.f32.xlu0 %v1176_v15  ;;  %v1200_v33 = vadd.f32 %v1193_v32, %v1192_v50  ;;  %v742_v15 = vmul.f32 0.5, %v741_v27 }
 0x513   : > { %1201 = vadd.xlane.f32.xlu2 %v1200_v33  ;;  %v743_v32 = vsub.f32 1.5, %v742_v15 }
 0x515   : > { %v744_v34 = vmul.f32 %v1678_v11, %v743_v32 }
 0x516   : > { %v2293_v35 = vpop.f32.mrf.mxu2  ;;  %v2295_v20 = vpop.f32.mrf.mxu3 }
 0x517   : > { %v1179_v2 = vadd.f32 %v2295_v20, %v2293_v35  ;;  %v1194_v9 = vmul.f32 %v2293_v35, %v2293_v35  ;;  %v1195_v12 = vmul.f32 %v2295_v20, %v2295_v20  ;;  %v748_v33 = vsel %vm747_vm5, %v1678_v11, %v744_v34 }
 0x518   : > { %v752_v36 = vmul.f32 %v748_v33, %v2012_v31 }
 0x519   : > { %v1203_v25 = vadd.f32 %v1195_v12, %v1194_v9  ;;  %v1796_v12 = vmov 4  }
 0x51b   : > { %1180 = vadd.xlane.f32.xlu2 %v1179_v2  ;;  %v756_v2 = vmul.f32 %v752_v36, %v668_v44 }
 0x51e   : > { %v2299_v8 = vpop.f32.mrf.mxu2  ;;  %v2301_v38 = vpop.f32.mrf.mxu3 }
 0x51f   : > { %v1182_v17 = vadd.f32 %v2301_v38, %v2299_v8  ;;  %v1196_v14 = vmul.f32 %v2299_v8, %v2299_v8  ;;  %v1197_v48 = vmul.f32 %v2301_v38, %v2301_v38 }
 0x521   : > { %1183 = vadd.xlane.f32.xlu1 %v1182_v17  ;;  %v1206_v50 = vadd.f32 %v1197_v48, %v1196_v14 }
 0x526   : > { %v2312_v18 = vpop.f32.mrf.mxu2  ;;  %v2314_v52 = vpop.f32.mrf.mxu3 }
 0x527   : > { %v1198_v24 = vmul.f32 %v2312_v18, %v2312_v18  ;;  %v1199_v19 = vmul.f32 %v2314_v52, %v2314_v52  ;;  %v1185_v16 = vadd.f32 %v2314_v52, %v2312_v18 }
 0x529   : > { %1204 = vadd.xlane.f32.xlu1 %v1203_v25  ;;  %1186 = vadd.xlane.f32.xlu0 %v1185_v16  ;;  %v1209_v29 = vadd.f32 %v1199_v19, %v1198_v24 }
 0x52b   : > { %1210 = vadd.xlane.f32.xlu2 %v1209_v29 }
 0x531   : > { %1207 = vadd.xlane.f32.xlu0 %v1206_v50 }
 0x53c   : > { %v762_v17 = vpop.permute.xlu2 %761 }
 0x53d   : > { %v773_v9 = vsub.f32 %v2019_v41, %v762_v17 }
 0x542   : > { %767 = vrot.lane.b32.xlu1 %v756_v2, %s1792_s8 }
 0x543   : > { %784 = vperm.xlu2 %1646, %v2271_v13  }
 0x545   : > { %779 = vperm.xlu0 %1645, %v749_v26  }
 0x54a   : > { %789 = vperm.xlu1 %1647, %v2267_v3  }
 0x54b   : > { %794 = vperm.xlu2 %1646, %v752_v36  }
 0x54c   : > { %v2335_v3 = vpop.permute.xlu1 %765 }
 0x54e   : > { %v2333_v28 = vpop.permute.xlu0 %763 }
 0x552   : > { %1648 = vset.pattern.permute.xlu1 %v1796_v12 }
 0x553   : > { %807 = vperm.xlu1 %1648, %v773_v9   ;;  %1649 = vset.pattern.permute.xlu2 %v1796_v12 }
 0x584   : > { %v1178_v31 = vpop.xlane.xlu0 %1177 }
 0x585   : > { %v1188_v44 = vmul.f32 0.00390625, %v1178_v31 }
 0x586   : > { %v1202_v11 = vpop.xlane.xlu2 %1201 }
 0x587   : > { %v1216_v54 = vmul.f32 %v1188_v44, %v1188_v44  ;;  %v1212_v13 = vmul.f32 0.00390625, %v1202_v11 }
 0x589   : > { %v1220_v26 = vsub.f32 %v1212_v13, %v1216_v54 }
 0x58b   : > { %v1224_v24 = vmax.f32 %v1220_v26, 0.0 }
 0x58d   : > { %v1228_v19 = vadd.f32 1e-05, %v1224_v24 }
 0x58e   : > { %v1181_v27 = vpop.xlane.xlu2 %1180 }
 0x58f   : > { %1679 = vrsqrt.f32 %v1228_v19  ;;  %v2337_v14 = vmul.f32 0.00390625, %v1181_v27  ;;  %vm1238_vm7 = vweird.f32 %v1228_v19 }
 0x591   : > { %v1217_v34 = vmul.f32 %v2337_v14, %v2337_v14 }
 0x594   : > { %v1184_v41 = vpop.xlane.xlu1 %1183 }
 0x595   : > { %v1680_v25 = vpop.eup %1679  ;;  %v1190_v13 = vmul.f32 0.00390625, %v1184_v41 }
 0x596   : > { %v1233_v16 = vmul.f32 %v1680_v25, %v1228_v19  ;;  %vm1239_vm6 = vweird.f32 %v1680_v25 }
 0x597   : > { %vm1240_vm8 = vmor %vm1238_vm7, %vm1239_vm6 }
 0x598   : > { %v1234_v29 = vmul.f32 %v1680_v25, %v1233_v16  ;;  %v2344_v16 = vld [vmem:[%s2483_s4] sm:$0xff] }
 0x59a   : > { %v1235_v48 = vmul.f32 0.5, %v1234_v29 }
 0x59c   : > { %v1236_v15 = vsub.f32 1.5, %v1235_v48  ;;  %v1205_v50 = vpop.xlane.xlu1 %1204  ;;  %v1187_v32 = vpop.xlane.xlu0 %1186 }
 0x59d   : > { %v1213_v33 = vmul.f32 0.00390625, %v1205_v50  ;;  %v1191_v36 = vmul.f32 0.00390625, %v1187_v32  ;;  %v1218_v50 = vmul.f32 %v1190_v13, %v1190_v13 }
 0x59e   : > { %v1211_v2 = vpop.xlane.xlu2 %1210  ;;  %v1237_v17 = vmul.f32 %v1680_v25, %v1236_v15 }
 0x59f   : > { %v1221_v9 = vsub.f32 %v1213_v33, %v1217_v34  ;;  %v1219_v31 = vmul.f32 %v1191_v36, %v1191_v36  ;;  %v1215_v11 = vmul.f32 0.00390625, %v1211_v2 }
 0x5a0   : > { %v1241_v54 = vsel %vm1240_vm8, %v1680_v25, %v1237_v17 }
 0x5a1   : > { %v1225_v26 = vmax.f32 %v1221_v9, 0.0  ;;  %v1223_v24 = vsub.f32 %v1215_v11, %v1219_v31  ;;  %v2347_v27 = vmul.f32 %v2344_v16, %v1241_v54 }
 0x5a3   : > { %v1229_v29 = vadd.f32 1e-05, %v1225_v26  ;;  %v1227_v19 = vmax.f32 %v1223_v24, 0.0  ;;  %v1276_v48 = vmul.f32 %v2347_v27, %v1188_v44 }
 0x5a4   : > { %v1208_v15 = vpop.xlane.xlu0 %1207 }
 0x5a5   : > { %1681 = vrsqrt.f32 %v1229_v29  ;;  %v1231_v32 = vadd.f32 1e-05, %v1227_v19  ;;  %v1214_v25 = vmul.f32 0.00390625, %v1208_v15  ;;  %1284 = vrot.lane.b32.xlu2 %v1276_v48, %s1792_s8  ;;  %vm1248_vm10 = vweird.f32 %v1229_v29 }
 0x5a7   : > { %1683 = vrsqrt.f32 %v1231_v32  ;;  %v1222_v41 = vsub.f32 %v1214_v25, %v1218_v50  ;;  %vm1268_vm13 = vweird.f32 %v1231_v32 }
 0x5a9   : > { %v1226_v34 = vmax.f32 %v1222_v41, 0.0 }
 0x5ab   : > { %v1682_v33 = vpop.eup %1681  ;;  %v1230_v2 = vadd.f32 1e-05, %v1226_v34 }
 0x5ac   : > { %v1243_v17 = vmul.f32 %v1682_v33, %v1229_v29  ;;  %vm1249_vm9 = vweird.f32 %v1682_v33 }
 0x5ad   : > { %v1684_v9 = vpop.eup %1683  ;;  %1685 = vrsqrt.f32 %v1230_v2  ;;  %vm1250_vm12 = vmor %vm1248_vm10, %vm1249_vm9  ;;  %vm1258_vm0 = vweird.f32 %v1230_v2 }
 0x5ae   : > { %v1244_v31 = vmul.f32 %v1682_v33, %v1243_v17  ;;  %v1263_v11 = vmul.f32 %v1684_v9, %v1231_v32  ;;  %vm1269_vm11 = vweird.f32 %v1684_v9  ;;  %v2354_v17 = vld [vmem:[%s2483_s4 + $0x8] sm:$0xff] }
 0x5af   : > { %vm1270_vm14 = vmor %vm1268_vm13, %vm1269_vm11 }
 0x5b0   : > { %v1245_v54 = vmul.f32 0.5, %v1244_v31  ;;  %v1264_v26 = vmul.f32 %v1684_v9, %v1263_v11 }
 0x5b2   : > { %v1246_v44 = vsub.f32 1.5, %v1245_v54  ;;  %v1265_v24 = vmul.f32 0.5, %v1264_v26  ;;  %v1689_v26 = vld [vmem:[%s2483_s4 + $0x18] sm:$0xff] }
 0x5b3   : > { %v1686_v46 = vpop.eup %1685 }
 0x5b4   : > { %v1266_v19 = vsub.f32 1.5, %v1265_v24  ;;  %v1253_v48 = vmul.f32 %v1686_v46, %v1230_v2  ;;  %v768_v15 = vpop.permute.xlu1 %767  ;;  %v1247_v50 = vmul.f32 %v1682_v33, %v1246_v44  ;;  %vm1259_vm15 = vweird.f32 %v1686_v46 }
 0x5b5   : > { %vm1260_vm1 = vmor %vm1258_vm0, %vm1259_vm15 }
 0x5b6   : > { %v1254_v25 = vmul.f32 %v1686_v46, %v1253_v48  ;;  %v1251_v41 = vsel %vm1250_vm12, %v1682_v33, %v1247_v50  ;;  %v1267_v34 = vmul.f32 %v1684_v9, %v1266_v19 }
 0x5b7   : > { %v1273_v31 = vmul.f32 %v2354_v17, %v1251_v41  ;;  %v780_v50 = vpop.permute.xlu0 %779  ;;  %v776_v41 = vsub.f32 %v1689_v26, %v768_v15 }
 0x5b8   : > { %v1255_v11 = vmul.f32 0.5, %v1254_v25  ;;  %v1271_v29 = vsel %vm1270_vm14, %v1684_v9, %v1267_v34  ;;  %v798_v2 = vmul.f32 %v780_v50, %v2112_v59 }
 0x5b9   : > { %v1277_v54 = vmul.f32 %v1273_v31, %v2337_v14  ;;  %v1275_v32 = vmul.f32 %v1689_v26, %v1271_v29  ;;  %v1690_v14 = vld [vmem:[%s2483_s4 + $0x10] sm:$0xff] }
 0x5ba   : > { %v1256_v44 = vsub.f32 1.5, %v1255_v11  ;;  %v343_v11 = vadd.f32 %v2096_v53, %v2238_v37  ;;  %v785_v53 = vpop.permute.xlu2 %784 }
 0x5bb   : > { %1286 = vrot.lane.b32.xlu0 %v1277_v54, %s1792_s8  ;;  %v1279_v33 = vmul.f32 %v1275_v32, %v1191_v36  ;;  %v797_v36 = vmul.f32 %v780_v50, %v2110_v58  ;;  %v774_v58 = vsub.f32 %v2354_v17, %v2333_v28 }
 0x5bc   : > { %v2362_v24 = vpop.permute.xlu1 %789  ;;  %v1257_v19 = vmul.f32 %v1686_v46, %v1256_v44  ;;  %v775_v44 = vsub.f32 %v1690_v14, %v2335_v3 }
 0x5bd   : > { %1290 = vrot.lane.b32.xlu2 %v1279_v33, %s1792_s8 }
 0x5be   : > { %v1261_v9 = vsel %vm1260_vm1, %v1686_v46, %v1257_v19  ;;  %v324_v46 = vadd.f32 %v2094_v51, %v2238_v37  ;;  %v2492_v51 = vmov 3  }
 0x5bf   : > { %v1274_v48 = vmul.f32 %v1690_v14, %v1261_v9 }
 0x5c1   : > { %v1278_v25 = vmul.f32 %v1274_v48, %v1190_v13 }
 0x5c2   : > { %v795_v37 = vpop.permute.xlu2 %794 }
 0x5c3   : > { %1288 = vrot.lane.b32.xlu1 %v1278_v25, %s1792_s8  ;;  %1312 = vperm.xlu0 %1645, %v1274_v48   ;;  %s2380_s8 = scalar_lea.vmem [#allocation5], %s1480_s15 }
 0x5c4   : > { %s1395_s22 = sshll.u32 %s2380_s8, 4  ;;  %s1396_s22 = int_to_ptr.vmem [resolvable:$true] %s1395_s22 }
 0x5c5   : > { %v808_v34 = vpop.permute.xlu1 %807  ;;  %822 = vperm.xlu2 %1649, %v776_v41  }
 0x5c6   : > { %v825_v29 = vadd.f32 %v808_v34, %v797_v36  ;;  %v826_v54 = vadd.f32 %v808_v34, %v798_v2 }
 0x5c8   : > { %v833_v13 = vadd.f32 %v825_v29, %v324_v46  ;;  %v834_v15 = vadd.f32 %v826_v54, %v343_v11  ;;  %v799_v11 = vmul.f32 %v785_v53, %v2114_v7  ;;  %v800_v29 = vmul.f32 %v785_v53, %v2116_v60 }
 0x5c9   : > { %v345_v7 = vadd.f32 %v2100_v55, %v2260_v43 }
 0x5ca   : > { %v841_v33 = vmax.f32 %v833_v13, 0.0  ;;  %v842_v59 = vmax.f32 %v834_v15, 0.0  ;;  %v329_v13 = vadd.f32 %v2102_v56, %v2236_v1 }
 0x5cb   : > { %817 = vperm.xlu1 %1648, %v775_v44   ;;  %1652 = vset.pattern.permute.xlu0 %v1796_v12 }
 0x5cc   : > { %849 = vst [vmem:[%s2380_s8] sm:$0xff] %v841_v33  ;;  %812 = vperm.xlu0 %1652, %v774_v58  }
 0x5cd   : > { %850 = vst [vmem:[%s2380_s8 + $0x8] sm:$0xff] %v842_v59  ;;  %1651 = vset.pattern.permute.xlu2 %v2492_v51 }
 0x5ce   : > { %1307 = vperm.xlu2 %1651, %v1273_v31   ;;  %v803_v31 = vmul.f32 %v795_v37, %v2122_v63 }
 0x5d3   : > { %1650 = vset.pattern.permute.xlu1 %v2492_v51 }
 0x5d4   : > { %1302 = vperm.xlu1 %1650, %v2347_v27   ;;  %v804_v27 = vmul.f32 %v795_v37, %v2124_v0 }
 0x5d6   : > { %1653 = vset.pattern.permute.xlu2 %v1796_v12 }
 0x5dc   : > { %1317 = vperm.xlu1 %1650, %v1275_v32   ;;  %v331_v32 = vadd.f32 %v2106_v57, %v2264_v40  ;;  %v801_v57 = vmul.f32 %v2362_v24, %v2118_v61 }
 0x5e4   : > { %1654 = vset.pattern.permute.xlu1 %v1796_v12  ;;  %v350_v12 = vadd.f32 %v2108_v6, %v2264_v40  ;;  %v802_v6 = vmul.f32 %v2362_v24, %v2120_v62  ;;  %v326_v62 = vadd.f32 %v2098_v47, %v2260_v43 }
 0x5ff   : > { %v1285_v28 = vpop.permute.xlu2 %1284 }
 0x600   : > { %v1296_v3 = vsub.f32 %v2344_v16, %v1285_v28 }
 0x602   : > { %1330 = vperm.xlu2 %1653, %v1296_v3  }
 0x617   : > { %v1291_v19 = vpop.permute.xlu2 %1290 }
 0x618   : > { %v1299_v9 = vsub.f32 %v1689_v26, %v1291_v19 }
 0x61a   : > { %1345 = vperm.xlu0 %1652, %v1299_v9  }
 0x61f   : > { %v823_v48 = vpop.permute.xlu2 %822 }
 0x620   : > { %v831_v50 = vadd.f32 %v823_v48, %v803_v31  ;;  %v832_v25 = vadd.f32 %v823_v48, %v804_v27 }
 0x622   : > { %v839_v16 = vadd.f32 %v831_v50, %v331_v32  ;;  %v840_v41 = vadd.f32 %v832_v25, %v350_v12 }
 0x624   : > { %v847_v36 = vmax.f32 %v839_v16, 0.0  ;;  %v848_v2 = vmax.f32 %v840_v41, 0.0 }
 0x626   : > { %855 = vst [vmem:[%s2380_s8 + $0x30] sm:$0xff] %v847_v36 }
 0x627   : > { %856 = vst [vmem:[%s2380_s8 + $0x38] sm:$0xff] %v848_v2 }
 0x628   : > { %v1308_v47 = vpop.permute.xlu2 %1307 }
 0x62d   : > { %v1287_v26 = vpop.permute.xlu0 %1286 }
 0x62e   : > { %v1297_v63 = vsub.f32 %v2354_v17, %v1287_v26  ;;  %v348_v17 = vadd.f32 %v2104_v49, %v2236_v1 }
 0x630   : > { %1335 = vperm.xlu1 %1654, %v1297_v63  }
 0x635   : > { %v1289_v0 = vpop.permute.xlu1 %1288  ;;  %v1313_v34 = vpop.permute.xlu0 %1312 }
 0x636   : > { %v1298_v46 = vsub.f32 %v1690_v14, %v1289_v0  ;;  %v1324_v36 = vmul.f32 %v1313_v34, %v2299_v8  ;;  %v1322_v8 = vmul.f32 %v1308_v47, %v2293_v35 }
 0x638   : > { %1340 = vperm.xlu2 %1653, %v1298_v46  }
 0x63d   : > { %v818_v54 = vpop.permute.xlu1 %817 }
 0x63e   : > { %v829_v14 = vadd.f32 %v818_v54, %v801_v57  ;;  %v830_v15 = vadd.f32 %v818_v54, %v802_v6  ;;  %v813_v61 = vpop.permute.xlu0 %812 }
 0x63f   : > { %v827_v60 = vadd.f32 %v813_v61, %v799_v11  ;;  %v828_v24 = vadd.f32 %v813_v61, %v800_v29 }
 0x640   : > { %v837_v44 = vadd.f32 %v829_v14, %v329_v13  ;;  %v838_v56 = vadd.f32 %v830_v15, %v348_v17 }
 0x641   : > { %v835_v58 = vadd.f32 %v827_v60, %v326_v62  ;;  %v836_v33 = vadd.f32 %v828_v24, %v345_v7 }
 0x642   : > { %v845_v49 = vmax.f32 %v837_v44, 0.0  ;;  %v846_v1 = vmax.f32 %v838_v56, 0.0 }
 0x643   : > { %v843_v59 = vmax.f32 %v835_v58, 0.0  ;;  %v844_v51 = vmax.f32 %v836_v33, 0.0 }
 0x644   : > { %853 = vst [vmem:[%s2380_s8 + $0x20] sm:$0xff] %v845_v49 }
 0x645   : > { %854 = vst [vmem:[%s2380_s8 + $0x28] sm:$0xff] %v846_v1 }
 0x646   : > { %851 = vst [vmem:[%s2380_s8 + $0x10] sm:$0xff] %v843_v59  ;;  %v1303_v53 = vpop.permute.xlu1 %1302 }
 0x647   : > { %852 = vst [vmem:[%s2380_s8 + $0x18] sm:$0xff] %v844_v51  ;;  %v1320_v55 = vmul.f32 %v1303_v53, %v2283_v30  ;;  %v1321_v37 = vmul.f32 %v1303_v53, %v2285_v22  ;;  %v887_v22 = vadd.f32 %v2278_v42, %v2264_v40 }
 0x64e   : > { %v1318_v32 = vpop.permute.xlu1 %1317 }
 0x64f   : > { %v1326_v12 = vmul.f32 %v1318_v32, %v2312_v18  ;;  %v1327_v50 = vmul.f32 %v1318_v32, %v2314_v52  ;;  %v1325_v18 = vmul.f32 %v1313_v34, %v2301_v38  ;;  %v1323_v38 = vmul.f32 %v1308_v47, %v2295_v20 }
 0x65c   : > { %v1331_v28 = vpop.permute.xlu2 %1330 }
 0x65d   : > { %v1348_v3 = vadd.f32 %v1331_v28, %v1320_v55  ;;  %v1349_v19 = vadd.f32 %v1331_v28, %v1321_v37 }
 0x65f   : > { %v1356_v9 = vadd.f32 %v1348_v3, %v2247_v39  ;;  %v1357_v31 = vadd.f32 %v1349_v19, %v2250_v21  ;;  %v906_v39 = vadd.f32 %v2280_v45, %v2264_v40 }
 0x661   : > { %v1364_v27 = vmax.f32 %v1356_v9, 0.0  ;;  %v1365_v48 = vmax.f32 %v1357_v31, 0.0 }
 0x663   : > { %1547 = vst [vmem:[%s2380_s8 + $0x40] sm:$0xff] %v1364_v27 }
 0x664   : > { %1548 = vst [vmem:[%s2380_s8 + $0x48] sm:$0xff] %v1365_v48 }
 0x68c   : > { %v1346_v30 = vpop.permute.xlu0 %1345 }
 0x68d   : > { %v1354_v25 = vadd.f32 %v1346_v30, %v1326_v12  ;;  %v1355_v21 = vadd.f32 %v1346_v30, %v1327_v50 }
 0x68f   : > { %v1362_v16 = vadd.f32 %v1354_v25, %v887_v22  ;;  %v1363_v41 = vadd.f32 %v1355_v21, %v906_v39 }
 0x691   : > { %v1370_v52 = vmax.f32 %v1362_v16, 0.0  ;;  %v1371_v2 = vmax.f32 %v1363_v41, 0.0 }
 0x692   : > { %v1341_v26 = vpop.permute.xlu2 %1340 }
 0x693   : > { %1553 = vst [vmem:[%s2380_s8 + $0x70] sm:$0xff] %v1370_v52  ;;  %v1352_v63 = vadd.f32 %v1341_v26, %v1324_v36  ;;  %v1353_v42 = vadd.f32 %v1341_v26, %v1325_v18 }
 0x694   : > { %1554 = vst [vmem:[%s2380_s8 + $0x78] sm:$0xff] %v1371_v2 }
 0x695   : > { %v1360_v40 = vadd.f32 %v1352_v63, %v2241_v4  ;;  %v1361_v45 = vadd.f32 %v1353_v42, %v2244_v5  ;;  %v882_v4 = vadd.f32 %v2228_v10, %v2260_v43  ;;  %v901_v5 = vadd.f32 %v2230_v23, %v2260_v43 }
 0x697   : > { %v1368_v0 = vmax.f32 %v1360_v40, 0.0  ;;  %v1369_v46 = vmax.f32 %v1361_v45, 0.0 }
 0x699   : > { %1551 = vst [vmem:[%s2380_s8 + $0x60] sm:$0xff] %v1368_v0 }
 0x69a   : > { %1552 = vst [vmem:[%s2380_s8 + $0x68] sm:$0xff] %v1369_v46 }
 0x6a2   : > { %v1336_v34 = vpop.permute.xlu1 %1335 }
 0x6a3   : > { %v1350_v57 = vadd.f32 %v1336_v34, %v1322_v8  ;;  %v1351_v6 = vadd.f32 %v1336_v34, %v1323_v38 }
 0x6a5   : > { %v1358_v35 = vadd.f32 %v1350_v57, %v882_v4  ;;  %v1359_v20 = vadd.f32 %v1351_v6, %v901_v5 }
 0x6a7   : > { %v1366_v11 = vmax.f32 %v1358_v35, 0.0  ;;  %v1367_v29 = vmax.f32 %v1359_v20, 0.0 }
 0x6a9   : > { %1549 = vst [vmem:[%s2380_s8 + $0x50] sm:$0xff] %v1366_v11 }
 0x6aa   : > { %1550 = vst [vmem:[%s2380_s8 + $0x58] sm:$0xff] %v1367_v29 }
 0x6ab   : > { %1748 = shalt.err (!%p1745_p4)
}
 0x6ac   : > { %s1797_s12 = smov 256   ;;  %s1798_s15 = smov 16  }
 0x6ad   : > { %1577 = dma.vmem_to_hbm [thread:$0]  (%p1879_p11), %s1396_s22, 2048, %s1398_s26, %s1382_s28, %s1797_s12, %s1797_s12, %s1798_s15  }
 0x6ae PF: > { %s1412_s8 = sand.u32 1, %s1775_s18   ;;  %p2493_p7 = scmp.ge.s32.totalorder %s1787_s21, 2 }
 0x6af   : > { %s1413_s29 = scalar_lea.sflag [#allocation4], %s1412_s8 }
 0x6b0   : > { %p1584_p5 = pnand %p2493_p7, %p1883_p12 }
 0x6b2   : > { %p1585_p8 = pneg %p1584_p5 }
 0x6b4   : > { %1770 = dma.done.wait (%p1585_p8), %s1413_s29, 2048  }
 0x6b5   : > { %1772 = vsyncadd (%p1585_p8), %s1413_s29, 4294965248  ;;  %p18_p10 = scmp.ge.s32.totalorder %s1854_s24, 4   ;;  %s2494_s18 = smov %s1779_s19 }
 0x6b6   : > { %s2495_s19 = smov %s1783_s20  ;;  %s2496_s20 = smov %s1866_s27 }
 0x6b7   : > { %s2497_s21 = smov %s1854_s24  ;;  %20 = sbr.rel (!%p18_p10) target bundleno = 5 (0x5), region = 87 }
 0x6bc   :  { %1419 = vsyncpa [#allocation3], 1 }
 0x6bd   :  { %1421 = vsyncpa [#allocation3 + $0x1], 1 }
 0x6be   :  { %1422 = vsyncpa [#allocation4], 1 }
 0x6bf   :  { %1424 = vsyncpa [#allocation4 + $0x1], 1 }

</bundles_post_ra>
